<compile_context>
chip_gen: v6e
topology: v6e:2x2x1
jax: 0.10.0
libtpu: 0.0.40
codegen_flags: <defaults>
</compile_context>

<pallas_src>
import jax
import jax.numpy as jnp
from jax import lax
from jax.experimental import pallas as pl
from jax.experimental.pallas import tpu as pltpu


# -----------------------------------------------------------------------------
# Host helpers
# -----------------------------------------------------------------------------
def _pad_up(n, m):
    return ((n + m - 1) // m) * m


def _pick_tiles(n):
    """(TM, TN) with TM | TN. Keep >=2 row blocks for small n (v7x has 2 TCs)
    and cap TM*TN at 256x512 so the default scoped-VMEM limit holds."""
    if n <= 1024:
        return 128, 256
    if n <= 8192:
        return 256, 256
    return 256, 512


def _pad_coords(c, np_):
    """Pad by replicating the last row: keeps per-block bounding boxes tight.
    Padded duplicates are harmless (zero features / excluded as center)."""
    n = c.shape[0]
    pad = jnp.broadcast_to(c[-1:], (np_ - n, c.shape[1]))
    return jnp.concatenate([c, pad], axis=0).astype(jnp.int32)


def _block_bboxes(coords_p, t):
    """Per-block [bmin,bmax,xmin,xmax,ymin,ymax,zmin,zmax], flattened (SMEM)."""
    nb = coords_p.shape[0] // t
    c = coords_p.reshape(nb, t, 4)
    mn = jnp.min(c, axis=1)
    mx = jnp.max(c, axis=1)
    box = jnp.stack([mn[:, 0], mx[:, 0], mn[:, 1], mx[:, 1],
                     mn[:, 2], mx[:, 2], mn[:, 3], mx[:, 3]], axis=1)
    return box.reshape(-1).astype(jnp.int32)


# -----------------------------------------------------------------------------
# Block-pair interaction test from scalar-prefetched bounding boxes (SMEM).
# Layout per block (8 ints): [bmin, bmax, xmin, xmax, ymin, ymax, zmin, zmax]
# -----------------------------------------------------------------------------
def _blocks_may_interact(rb_ref, cb_ref, i, j):
    ro = i * 8
    co = j * 8
    # batch ranges must overlap
    ok = (rb_ref[ro + 1] >= cb_ref[co + 0]) & (cb_ref[co + 1] >= rb_ref[ro + 0])
    # spatial bboxes dilated by 1 must overlap on every axis (conservative)
    for a in range(1, 4):
        ok = ok & (rb_ref[ro + 2 * a + 1] + 1 >= cb_ref[co + 2 * a]) \
                & (cb_ref[co + 2 * a + 1] + 1 >= rb_ref[ro + 2 * a])
    return ok


# -----------------------------------------------------------------------------
# Kernel 1: correlation score  corr = neighbour-sum / self-squared-norm
# Grid = (row blocks, col blocks); col axis is the reduction. Output is the
# lane-dense (1, Np) row; the mask is built transposed (TN, TM) so the
# neighbour reduction is a sublane (axis=0) sum.
# -----------------------------------------------------------------------------
def _corr_kernel(rb_ref, cb_ref, cti_ref, cj_ref, scol_ref, fti_ref,
                 corr_ref, acc_ref):
    i = pl.program_id(0)
    j = pl.program_id(1)

    @pl.when(j == 0)
    def _():
        acc_ref[...] = jnp.zeros_like(acc_ref)

    can = _blocks_may_interact(rb_ref, cb_ref, i, j)

    @pl.when(can)
    def _():
        cti = cti_ref[...]            # (4, TM) int32  row points (transposed)
        cj = cj_ref[...]              # (TN, 4) int32  col points
        s_col = scol_ref[...]         # (TN, 1) f32    per-point channel sums

        bi, xi, yi, zi = cti[0:1, :], cti[1:2, :], cti[2:3, :], cti[3:4, :]
        bj, xj, yj, zj = cj[:, 0:1], cj[:, 1:2], cj[:, 2:3], cj[:, 3:4]
        adx = jnp.abs(xj - xi)        # (TN, TM)
        ady = jnp.abs(yj - yi)
        adz = jnp.abs(zj - zi)
        # center fold: inside the 3x3x3 window and not the exact center
        adj = (bi == bj) & (adx <= 1) & (ady <= 1) & (adz <= 1) \
              & ((adx + ady + adz) >= 1)
        contrib = jnp.where(adj, s_col, 0.0)                       # (TN, TM)
        acc_ref[...] += jnp.sum(contrib, axis=0, keepdims=True)    # (1, TM)

    @pl.when(j == pl.num_programs(1) - 1)
    def _():
        fti = fti_ref[...]                                    # (Cin, TM)
        norm = jnp.sum(fti * fti, axis=0, keepdims=True)      # (1, TM)
        # exact division (finalize-only; negligible cost, matches torch)
        corr_ref[...] = acc_ref[...] / jnp.maximum(norm, 1e-12)


# -----------------------------------------------------------------------------
# Kernel 2: dw 3x3x3 sparse conv over the compacted strong subset (im2col).
# Per (i, j) block pair: keyed tap-id mask (hoisted), then a bounded 27-tap
# fori_loop of (TM,TN)@(TN,Cin) f32 matmuls accumulated into a (27,TM,Cin)
# VMEM scratch; the (Cin,Cout) weights are applied once per row block.
# -----------------------------------------------------------------------------
def _dw_kernel(rb_ref, cb_ref, ci_ref, ctj_ref, fj_ref, w_ref, o_ref, acc_ref):
    i = pl.program_id(0)
    j = pl.program_id(1)
    cout = o_ref.shape[1]

    @pl.when(j == 0)
    def _():
        acc_ref[...] = jnp.zeros_like(acc_ref)

    can = _blocks_may_interact(rb_ref, cb_ref, i, j)

    @pl.when(can)
    def _():
        ci = ci_ref[...]              # (TM, 4) int32
        ctj = ctj_ref[...]            # (4, TN) int32
        fj = fj_ref[...]              # (TN, Cin) f32

        bi, xi, yi, zi = ci[:, 0:1], ci[:, 1:2], ci[:, 2:3], ci[:, 3:4]
        bj, xj, yj, zj = ctj[0:1, :], ctj[1:2, :], ctj[2:3, :], ctj[3:4, :]
        dx = xj - xi                  # (TM, TN)
        dy = yj - yi
        dz = zj - zi
        base = (bi == bj) & (jnp.abs(dx) <= 1) & (jnp.abs(dy) <= 1) \
               & (jnp.abs(dz) <= 1)
        key = (dx + 1) * 9 + (dy + 1) * 3 + (dz + 1)           # (TM, TN) i32
        keyed = jnp.where(base, key, -1)                       # hoisted once

        def tap_body(t, carry):
            match = (keyed == t).astype(jnp.float32)           # (TM, TN)
            g = jnp.dot(match, fj, preferred_element_type=jnp.float32)
            acc_ref[t] = acc_ref[t] + g                        # (TM, Cin)
            return carry

        lax.fori_loop(0, 27, tap_body, 0, unroll=3)

    @pl.when(j == pl.num_programs(1) - 1)
    def _():
        out = jnp.zeros((o_ref.shape[0], cout), jnp.float32)
        for t in range(27):           # tiny (TM,Cin)@(Cin,Cout) finalize matmuls
            out = out + jnp.dot(acc_ref[t], w_ref[t],
                                preferred_element_type=jnp.float32)
        o_ref[...] = out.astype(o_ref.dtype)


# -----------------------------------------------------------------------------
# Wrapper
# -----------------------------------------------------------------------------
def adaconv_forward(coords, feats, th, dw_weight):
    """coords: (N,4) int32; feats: (N,Cin) f32; dw_weight: (27,Cin,Cout) f32.
    Returns (coords, out_feats, strong_mask, corr) in the original point
    order (matches the torch module's union output semantics)."""
    n, cin = feats.shape
    cout = dw_weight.shape[2]
    assert cin == cout, "MinkowskiUnion requires matching feature widths"

    coords = coords.astype(jnp.int32)
    feats = feats.astype(jnp.float32)

    cparams = pltpu.CompilerParams(
        dimension_semantics=("parallel", "arbitrary"))

    # ---- sort by (batch, x, y, z) for block locality / bbox skipping --------
    perm = jnp.lexsort((coords[:, 3], coords[:, 2], coords[:, 1], coords[:, 0]))
    coords_s = coords[perm]
    feats_s = feats[perm]

    # ---- Pallas kernel 1: correlation score ----------------------------------
    tm1, tn1 = _pick_tiles(n)
    np1 = _pad_up(n, tn1)
    coords_p = _pad_coords(coords_s, np1)                           # (Np,4)
    feats_p = jnp.concatenate(
        [feats_s, jnp.zeros((np1 - n, cin), jnp.float32)], axis=0)  # (Np,Cin)
    coords_t = coords_p.T                                           # (4,Np)
    feats_t = feats_p.T                                             # (Cin,Np)
    s_col = jnp.sum(feats_p, axis=1, keepdims=True)                 # (Np,1)

    row_boxes = _block_bboxes(coords_p, tm1)     # scalar-prefetch -> SMEM
    col_boxes = _block_bboxes(coords_p, tn1)
    n_i, n_j = np1 // tm1, np1 // tn1

    corr_out = pl.pallas_call(
        _corr_kernel,
        out_shape=jax.ShapeDtypeStruct((1, np1), jnp.float32),
        grid_spec=pltpu.PrefetchScalarGridSpec(
            num_scalar_prefetch=2,
            grid=(n_i, n_j),
            in_specs=[
                pl.BlockSpec((4, tm1), lambda i, j, rb, cb: (0, i)),
                pl.BlockSpec((tn1, 4), lambda i, j, rb, cb: (j, 0)),
                pl.BlockSpec((tn1, 1), lambda i, j, rb, cb: (j, 0)),
                pl.BlockSpec((cin, tm1), lambda i, j, rb, cb: (0, i)),
            ],
            out_specs=pl.BlockSpec((1, tm1), lambda i, j, rb, cb: (0, i)),
            scratch_shapes=[pltpu.VMEM((1, tm1), jnp.float32)],
        ),
        compiler_params=cparams,
    )(row_boxes, col_boxes, coords_t, coords_p, s_col, feats_t)

    corr_s = corr_out[0, :n]                                        # sorted order

    # ---- per-batch top-k mask: vectorized segmented ranking ------------------
    # (points are already sorted by batch; rank within batch by descending corr)
    batch_s = coords_s[:, 0]
    order = jnp.lexsort((-corr_s, batch_s))          # batch asc, corr desc
    batch_ord = batch_s[order]
    pos = jnp.arange(n)
    starts = jnp.searchsorted(batch_ord, batch_ord, side="left")
    ends = jnp.searchsorted(batch_ord, batch_ord, side="right")
    counts = (ends - starts).astype(jnp.float32)
    k_b = jnp.floor(counts * (float(th) / 3.21)).astype(jnp.int32)
    ranks = pos - starts
    strong_ord = ranks < k_b
    strong_s = jnp.zeros((n,), jnp.bool_).at[order].set(strong_ord)

    # ---- compact the strong subset (host-side glue: data-dependent size) -----
    strong_idx = jnp.nonzero(strong_s)[0]
    ns = int(strong_idx.shape[0])
    out_s = feats_s                                   # weak pass-through default

    if ns > 0:
        cs = coords_s[strong_idx]                     # still (batch,x,y,z) sorted
        fs = feats_s[strong_idx]
        tm2, tn2 = _pick_tiles(ns)
        nsp = _pad_up(ns, tn2)
        cs_p = _pad_coords(cs, nsp)
        fs_p = jnp.concatenate(
            [fs, jnp.zeros((nsp - ns, cin), jnp.float32)], axis=0)
        cs_t = cs_p.T
        rb2 = _block_bboxes(cs_p, tm2)
        cb2 = _block_bboxes(cs_p, tn2)
        n_i2, n_j2 = nsp // tm2, nsp // tn2
        w = dw_weight.astype(jnp.float32)             # (27, Cin, Cout), resident

        dw_out = pl.pallas_call(
            _dw_kernel,
            out_shape=jax.ShapeDtypeStruct((nsp, cout), jnp.float32),
            grid_spec=pltpu.PrefetchScalarGridSpec(
                num_scalar_prefetch=2,
                grid=(n_i2, n_j2),
                in_specs=[
                    pl.BlockSpec((tm2, 4), lambda i, j, rb, cb: (i, 0)),
                    pl.BlockSpec((4, tn2), lambda i, j, rb, cb: (0, j)),
                    pl.BlockSpec((tn2, cin), lambda i, j, rb, cb: (j, 0)),
                    pl.BlockSpec((27, cin, cout),
                                 lambda i, j, rb, cb: (0, 0, 0)),
                ],
                out_specs=pl.BlockSpec((tm2, cout), lambda i, j, rb, cb: (i, 0)),
                scratch_shapes=[pltpu.VMEM((27, tm2, cin), jnp.float32)],
            ),
            compiler_params=cparams,
        )(rb2, cb2, cs_p, cs_t, fs_p, w)

        out_s = out_s.at[strong_idx].set(dw_out[:ns])

    # ---- unsort back to the original point order ------------------------------
    out = jnp.zeros((n, cout), jnp.float32).at[perm].set(out_s)
    strong = jnp.zeros((n,), jnp.bool_).at[perm].set(strong_s)
    corr = jnp.zeros((n,), jnp.float32).at[perm].set(corr_s)
    return coords, out, strong, corr


# -----------------------------------------------------------------------------
# Dense plain-JAX reference (demo sanity check only)
# -----------------------------------------------------------------------------
def _dense_reference(coords, feats, strong_mask, dw_weight):
    n, cin = feats.shape
    cout = dw_weight.shape[2]
    c = coords.astype(jnp.int32)
    same_b = c[:, None, 0] == c[None, :, 0]
    d = c[None, :, 1:] - c[:, None, 1:]                    # xj - xi, (N,N,3)
    in_win = jnp.all(jnp.abs(d) <= 1, axis=-1)
    is_center = jnp.all(d == 0, axis=-1)
    adj = same_b & in_win & jnp.logical_not(is_center)

    s = jnp.sum(feats, axis=1)                             # (N,)
    nbr = jnp.sum(jnp.where(adj, s[None, :], 0.0), axis=1)
    norm = jnp.maximum(jnp.sum(feats * feats, axis=1), 1e-12)
    corr = nbr / norm

    key = (d[..., 0] + 1) * 9 + (d[..., 1] + 1) * 3 + (d[..., 2] + 1)
    base = same_b & in_win & strong_mask[:, None] & strong_mask[None, :]
    conv = jnp.zeros((n, cout), jnp.float32)
    for t in range(27):
        sel = (base & (key == t))[:, :, None]              # (N,N,1)
        nb = jnp.sum(jnp.where(sel, feats[None, :, :], 0.0), axis=1)
        conv = conv + nb @ dw_weight[t]
    out = jnp.where(strong_mask[:, None], conv, feats)
    return corr, out


# -----------------------------------------------------------------------------
# Demo
# -----------------------------------------------------------------------------
if __name__ == "__main__":
    key = jax.random.PRNGKey(0)
    B, n_per, Cin, Cout, grid_sz = 2, 300, 4, 4, 10
    th = 1.6

    # deterministic unique sparse coordinates per batch
    coords_list = []
    for b in range(B):
        key, sub = jax.random.split(key)
        flat = jax.random.permutation(sub, grid_sz ** 3)[:n_per]
        x = (flat // (grid_sz * grid_sz)).astype(jnp.int32)
        y = ((flat // grid_sz) % grid_sz).astype(jnp.int32)
        z = (flat % grid_sz).astype(jnp.int32)
        bcol = jnp.full((n_per,), b, jnp.int32)
        coords_list.append(jnp.stack([bcol, x, y, z], axis=1))
    coords = jnp.concatenate(coords_list, axis=0)                   # (600, 4)

    key, kf, kw = jax.random.split(key, 3)
    feats = jax.random.normal(kf, (B * n_per, Cin), jnp.float32)    # (600, 4)
    # self.dw = MinkowskiConvolution(Cin, Cout, kernel_size=3, stride=1,
    #                                bias=False, dimension=3): kernel (27,Cin,Cout)
    dw_weight = 0.1 * jax.random.normal(kw, (27, Cin, Cout), jnp.float32)

    out_coords, out_feats, strong_mask, corr = adaconv_forward(
        coords, feats, th, dw_weight)
    jax.block_until_ready(out_feats)

    # sanity checks: finite, corr matches dense reference, weak rows are
    # bit-exact pass-through, strong rows match the dense dw conv.
    corr_ref, out_ref = _dense_reference(coords, feats, strong_mask, dw_weight)
    assert bool(jnp.all(jnp.isfinite(out_feats)))
    assert bool(jnp.allclose(corr, corr_ref, rtol=1e-3, atol=1e-3))
    weak = jnp.logical_not(strong_mask)
    assert bool(jnp.allclose(out_feats[weak], feats[weak]))
    assert bool(jnp.allclose(out_feats, out_ref, rtol=3e-2, atol=3e-2))

    print("KERNEL_OK")
</pallas_src>

<mosaic_0001>
module attributes {stable_mosaic.version = 11 : i64} {
  func.func @_corr_kernel(%arg0: i32, %arg1: i32, %arg2: memref<48xi32, #tpu.memory_space<smem>>, %arg3: memref<24xi32, #tpu.memory_space<smem>>, %arg4: memref<4x128xi32, #tpu.memory_space<vmem>>, %arg5: memref<256x4xi32, #tpu.memory_space<vmem>>, %arg6: memref<256x1xf32, #tpu.memory_space<vmem>>, %arg7: memref<4x128xf32, #tpu.memory_space<vmem>>, %arg8: memref<1x128xf32, #tpu.memory_space<vmem>>, %arg9: memref<1x128xf32, #tpu.memory_space<vmem>>) attributes {dimension_semantics = [#tpu.dimension_semantics<parallel>, #tpu.dimension_semantics<arbitrary>], iteration_bounds = array<i64: 6, 3>, scalar_prefetch = 2 : i64, scratch_operands = 1 : i64, tpu.core_type = #tpu.core_type<tc>, window_params = [{transform_indices = @transform_0, window_bounds = array<i64: 4, 128>}, {transform_indices = @transform_1, window_bounds = array<i64: 256, 4>}, {transform_indices = @transform_2, window_bounds = array<i64: 256, 1>}, {transform_indices = @transform_3, window_bounds = array<i64: 4, 128>}, {transform_indices = @transform_4, window_bounds = array<i64: 1, 128>}]} {
    %c0_i32 = arith.constant 0 : i32
    %0 = arith.cmpi eq, %arg1, %c0_i32 : i32
    %1 = arith.extui %0 : i1 to i32
    %c0_i32_0 = arith.constant 0 : i32
    %2 = arith.cmpi ne, %1, %c0_i32_0 : i32
    scf.if %2 {
      %cst = arith.constant 0.000000e+00 : f32
      %85 = vector.broadcast %cst : f32 to vector<1x128xf32>
      %c0 = arith.constant 0 : index
      %c0_29 = arith.constant 0 : index
      %86 = vector.load %arg9[%c0, %c0_29] : memref<1x128xf32, #tpu.memory_space<vmem>>, vector<1x128xf32>
      tpu.vector_store %arg9[%c0, %c0_29], %85 {strides = array<i32>} : memref<1x128xf32, #tpu.memory_space<vmem>>, vector<1x128xf32>,
    } else {
    }
    %c8_i32 = arith.constant 8 : i32
    %3 = arith.muli %arg0, %c8_i32 : i32
    %c8_i32_1 = arith.constant 8 : i32
    %4 = arith.muli %arg1, %c8_i32_1 : i32
    %c1_i32 = arith.constant 1 : i32
    %5 = arith.addi %3, %c1_i32 : i32
    %6 = arith.index_cast %5 : i32 to index
    %7 = memref.load %arg2[%6] : memref<48xi32, #tpu.memory_space<smem>>
    %c0_i32_2 = arith.constant 0 : i32
    %8 = arith.addi %4, %c0_i32_2 : i32
    %9 = arith.index_cast %8 : i32 to index
    %10 = memref.load %arg3[%9] : memref<24xi32, #tpu.memory_space<smem>>
    %11 = arith.cmpi sge, %7, %10 : i32
    %c1_i32_3 = arith.constant 1 : i32
    %12 = arith.addi %4, %c1_i32_3 : i32
    %13 = arith.index_cast %12 : i32 to index
    %14 = memref.load %arg3[%13] : memref<24xi32, #tpu.memory_space<smem>>
    %c0_i32_4 = arith.constant 0 : i32
    %15 = arith.addi %3, %c0_i32_4 : i32
    %16 = arith.index_cast %15 : i32 to index
    %17 = memref.load %arg2[%16] : memref<48xi32, #tpu.memory_space<smem>>
    %18 = arith.cmpi sge, %14, %17 : i32
    %19 = arith.andi %11, %18 : i1
    %c2_i32 = arith.constant 2 : i32
    %20 = arith.addi %3, %c2_i32 : i32
    %c1_i32_5 = arith.constant 1 : i32
    %21 = arith.addi %20, %c1_i32_5 : i32
    %22 = arith.index_cast %21 : i32 to index
    %23 = memref.load %arg2[%22] : memref<48xi32, #tpu.memory_space<smem>>
    %c1_i32_6 = arith.constant 1 : i32
    %24 = arith.addi %23, %c1_i32_6 : i32
    %c2_i32_7 = arith.constant 2 : i32
    %25 = arith.addi %4, %c2_i32_7 : i32
    %26 = arith.index_cast %25 : i32 to index
    %27 = memref.load %arg3[%26] : memref<24xi32, #tpu.memory_space<smem>>
    %28 = arith.cmpi sge, %24, %27 : i32
    %29 = arith.andi %19, %28 : i1
    %c2_i32_8 = arith.constant 2 : i32
    %30 = arith.addi %4, %c2_i32_8 : i32
    %c1_i32_9 = arith.constant 1 : i32
    %31 = arith.addi %30, %c1_i32_9 : i32
    %32 = arith.index_cast %31 : i32 to index
    %33 = memref.load %arg3[%32] : memref<24xi32, #tpu.memory_space<smem>>
    %c1_i32_10 = arith.constant 1 : i32
    %34 = arith.addi %33, %c1_i32_10 : i32
    %c2_i32_11 = arith.constant 2 : i32
    %35 = arith.addi %3, %c2_i32_11 : i32
    %36 = arith.index_cast %35 : i32 to index
    %37 = memref.load %arg2[%36] : memref<48xi32, #tpu.memory_space<smem>>
    %38 = arith.cmpi sge, %34, %37 : i32
    %39 = arith.andi %29, %38 : i1
    %c4_i32 = arith.constant 4 : i32
    %40 = arith.addi %3, %c4_i32 : i32
    %c1_i32_12 = arith.constant 1 : i32
    %41 = arith.addi %40, %c1_i32_12 : i32
    %42 = arith.index_cast %41 : i32 to index
    %43 = memref.load %arg2[%42] : memref<48xi32, #tpu.memory_space<smem>>
    %c1_i32_13 = arith.constant 1 : i32
    %44 = arith.addi %43, %c1_i32_13 : i32
    %c4_i32_14 = arith.constant 4 : i32
    %45 = arith.addi %4, %c4_i32_14 : i32
    %46 = arith.index_cast %45 : i32 to index
    %47 = memref.load %arg3[%46] : memref<24xi32, #tpu.memory_space<smem>>
    %48 = arith.cmpi sge, %44, %47 : i32
    %49 = arith.andi %39, %48 : i1
    %c4_i32_15 = arith.constant 4 : i32
    %50 = arith.addi %4, %c4_i32_15 : i32
    %c1_i32_16 = arith.constant 1 : i32
    %51 = arith.addi %50, %c1_i32_16 : i32
    %52 = arith.index_cast %51 : i32 to index
    %53 = memref.load %arg3[%52] : memref<24xi32, #tpu.memory_space<smem>>
    %c1_i32_17 = arith.constant 1 : i32
    %54 = arith.addi %53, %c1_i32_17 : i32
    %c4_i32_18 = arith.constant 4 : i32
    %55 = arith.addi %3, %c4_i32_18 : i32
    %56 = arith.index_cast %55 : i32 to index
    %57 = memref.load %arg2[%56] : memref<48xi32, #tpu.memory_space<smem>>
    %58 = arith.cmpi sge, %54, %57 : i32
    %59 = arith.andi %49, %58 : i1
    %c6_i32 = arith.constant 6 : i32
    %60 = arith.addi %3, %c6_i32 : i32
    %c1_i32_19 = arith.constant 1 : i32
    %61 = arith.addi %60, %c1_i32_19 : i32
    %62 = arith.index_cast %61 : i32 to index
    %63 = memref.load %arg2[%62] : memref<48xi32, #tpu.memory_space<smem>>
    %c1_i32_20 = arith.constant 1 : i32
    %64 = arith.addi %63, %c1_i32_20 : i32
    %c6_i32_21 = arith.constant 6 : i32
    %65 = arith.addi %4, %c6_i32_21 : i32
    %66 = arith.index_cast %65 : i32 to index
    %67 = memref.load %arg3[%66] : memref<24xi32, #tpu.memory_space<smem>>
    %68 = arith.cmpi sge, %64, %67 : i32
    %69 = arith.andi %59, %68 : i1
    %c6_i32_22 = arith.constant 6 : i32
    %70 = arith.addi %4, %c6_i32_22 : i32
    %c1_i32_23 = arith.constant 1 : i32
    %71 = arith.addi %70, %c1_i32_23 : i32
    %72 = arith.index_cast %71 : i32 to index
    %73 = memref.load %arg3[%72] : memref<24xi32, #tpu.memory_space<smem>>
    %c1_i32_24 = arith.constant 1 : i32
    %74 = arith.addi %73, %c1_i32_24 : i32
    %c6_i32_25 = arith.constant 6 : i32
    %75 = arith.addi %3, %c6_i32_25 : i32
    %76 = arith.index_cast %75 : i32 to index
    %77 = memref.load %arg2[%76] : memref<48xi32, #tpu.memory_space<smem>>
    %78 = arith.cmpi sge, %74, %77 : i32
    %79 = arith.andi %69, %78 : i1
    %80 = arith.extui %79 : i1 to i32
    %c0_i32_26 = arith.constant 0 : i32
    %81 = arith.cmpi ne, %80, %c0_i32_26 : i32
    scf.if %81 {
      %c0 = arith.constant 0 : index
      %c0_29 = arith.constant 0 : index
      %85 = vector.load %arg4[%c0, %c0_29] : memref<4x128xi32, #tpu.memory_space<vmem>>, vector<4x128xi32>
      %c0_30 = arith.constant 0 : index
      %c0_31 = arith.constant 0 : index
      %86 = vector.load %arg5[%c0_30, %c0_31] : memref<256x4xi32, #tpu.memory_space<vmem>>, vector<256x4xi32>
      %c0_32 = arith.constant 0 : index
      %c0_33 = arith.constant 0 : index
      %87 = vector.load %arg6[%c0_32, %c0_33] : memref<256x1xf32, #tpu.memory_space<vmem>>, vector<256x1xf32>
      %88 = vector.extract_strided_slice %85 {offsets = [0, 0], sizes = [1, 128], strides = [1, 1]} : vector<4x128xi32> to vector<1x128xi32>
      %89 = vector.extract_strided_slice %85 {offsets = [1, 0], sizes = [1, 128], strides = [1, 1]} : vector<4x128xi32> to vector<1x128xi32>
      %90 = vector.extract_strided_slice %85 {offsets = [2, 0], sizes = [1, 128], strides = [1, 1]} : vector<4x128xi32> to vector<1x128xi32>
      %91 = vector.extract_strided_slice %85 {offsets = [3, 0], sizes = [1, 128], strides = [1, 1]} : vector<4x128xi32> to vector<1x128xi32>
      %92 = vector.extract_strided_slice %86 {offsets = [0, 0], sizes = [256, 1], strides = [1, 1]} : vector<256x4xi32> to vector<256x1xi32>
      %93 = vector.extract_strided_slice %86 {offsets = [0, 1], sizes = [256, 1], strides = [1, 1]} : vector<256x4xi32> to vector<256x1xi32>
      %94 = vector.extract_strided_slice %86 {offsets = [0, 2], sizes = [256, 1], strides = [1, 1]} : vector<256x4xi32> to vector<256x1xi32>
      %95 = vector.extract_strided_slice %86 {offsets = [0, 3], sizes = [256, 1], strides = [1, 1]} : vector<256x4xi32> to vector<256x1xi32>
      %96 = vector.broadcast %93 : vector<256x1xi32> to vector<256x128xi32>
      %97 = vector.broadcast %89 : vector<1x128xi32> to vector<256x128xi32>
      %98 = arith.subi %96, %97 : vector<256x128xi32>
      %99 = math.absi %98 : vector<256x128xi32>
      %100 = vector.broadcast %94 : vector<256x1xi32> to vector<256x128xi32>
      %101 = vector.broadcast %90 : vector<1x128xi32> to vector<256x128xi32>
      %102 = arith.subi %100, %101 : vector<256x128xi32>
      %103 = math.absi %102 : vector<256x128xi32>
      %104 = vector.broadcast %95 : vector<256x1xi32> to vector<256x128xi32>
      %105 = vector.broadcast %91 : vector<1x128xi32> to vector<256x128xi32>
      %106 = arith.subi %104, %105 : vector<256x128xi32>
      %107 = math.absi %106 : vector<256x128xi32>
      %108 = vector.broadcast %88 : vector<1x128xi32> to vector<256x128xi32>
      %109 = vector.broadcast %92 : vector<256x1xi32> to vector<256x128xi32>
      %110 = arith.cmpi eq, %108, %109 : vector<256x128xi32>
      %c1_i32_34 = arith.constant 1 : i32
      %111 = vector.broadcast %c1_i32_34 : i32 to vector<256x128xi32>
      %112 = arith.cmpi sle, %99, %111 : vector<256x128xi32>
      %113 = arith.andi %110, %112 : vector<256x128xi1>
      %c1_i32_35 = arith.constant 1 : i32
      %114 = vector.broadcast %c1_i32_35 : i32 to vector<256x128xi32>
      %115 = arith.cmpi sle, %103, %114 : vector<256x128xi32>
      %116 = arith.andi %113, %115 : vector<256x128xi1>
      %c1_i32_36 = arith.constant 1 : i32
      %117 = vector.broadcast %c1_i32_36 : i32 to vector<256x128xi32>
      %118 = arith.cmpi sle, %107, %117 : vector<256x128xi32>
      %119 = arith.andi %116, %118 : vector<256x128xi1>
      %120 = arith.addi %99, %103 : vector<256x128xi32>
      %121 = arith.addi %120, %107 : vector<256x128xi32>
      %c1_i32_37 = arith.constant 1 : i32
      %122 = vector.broadcast %c1_i32_37 : i32 to vector<256x128xi32>
      %123 = arith.cmpi sge, %121, %122 : vector<256x128xi32>
      %124 = arith.andi %119, %123 : vector<256x128xi1>
      %cst = arith.constant 0.000000e+00 : f32
      %125 = vector.shape_cast %87 : vector<256x1xf32> to vector<256x1xf32>
      %126 = vector.broadcast %125 : vector<256x1xf32> to vector<256x128xf32>
      %127 = vector.broadcast %cst : f32 to vector<256x128xf32>
      %128 = arith.select %124, %126, %127 : vector<256x128xi1>, vector<256x128xf32>
      %c0_38 = arith.constant 0 : index
      %c0_39 = arith.constant 0 : index
      %129 = vector.load %arg9[%c0_38, %c0_39] : memref<1x128xf32, #tpu.memory_space<vmem>>, vector<1x128xf32>
      %cst_40 = arith.constant dense<0.000000e+00> : vector<128xf32>
      %130 = vector.multi_reduction <add>, %128, %cst_40 [0] : vector<256x128xf32> to vector<128xf32>
      %131 = vector.shape_cast %130 : vector<128xf32> to vector<1x128xf32>
      %132 = arith.addf %129, %131 : vector<1x128xf32>
      %c0_41 = arith.constant 0 : index
      %c0_42 = arith.constant 0 : index
      %133 = vector.load %arg9[%c0_41, %c0_42] : memref<1x128xf32, #tpu.memory_space<vmem>>, vector<1x128xf32>
      tpu.vector_store %arg9[%c0_41, %c0_42], %132 {strides = array<i32>} : memref<1x128xf32, #tpu.memory_space<vmem>>, vector<1x128xf32>,
    } else {
    }
    %c2_i32_27 = arith.constant 2 : i32
    %82 = arith.cmpi eq, %arg1, %c2_i32_27 : i32
    %83 = arith.extui %82 : i1 to i32
    %c0_i32_28 = arith.constant 0 : i32
    %84 = arith.cmpi ne, %83, %c0_i32_28 : i32
    scf.if %84 {
      %c0 = arith.constant 0 : index
      %c0_29 = arith.constant 0 : index
      %85 = vector.load %arg7[%c0, %c0_29] : memref<4x128xf32, #tpu.memory_space<vmem>>, vector<4x128xf32>
      %86 = arith.mulf %85, %85 : vector<4x128xf32>
      %cst = arith.constant dense<0.000000e+00> : vector<128xf32>
      %87 = vector.multi_reduction <add>, %86, %cst [0] : vector<4x128xf32> to vector<128xf32>
      %88 = vector.shape_cast %87 : vector<128xf32> to vector<1x128xf32>
      %c0_30 = arith.constant 0 : index
      %c0_31 = arith.constant 0 : index
      %89 = vector.load %arg9[%c0_30, %c0_31] : memref<1x128xf32, #tpu.memory_space<vmem>>, vector<1x128xf32>
      %cst_32 = arith.constant 9.99999996E-13 : f32
      %90 = vector.broadcast %cst_32 : f32 to vector<1x128xf32>
      %91 = arith.maximumf %88, %90 : vector<1x128xf32>
      %92 = arith.divf %89, %91 : vector<1x128xf32>
      %c0_33 = arith.constant 0 : index
      %c0_34 = arith.constant 0 : index
      %93 = vector.load %arg8[%c0_33, %c0_34] : memref<1x128xf32, #tpu.memory_space<vmem>>, vector<1x128xf32>
      tpu.vector_store %arg8[%c0_33, %c0_34], %92 {strides = array<i32>} : memref<1x128xf32, #tpu.memory_space<vmem>>, vector<1x128xf32>,
    } else {
    }
    return
  }
  func.func @transform_0(%arg0: i32, %arg1: i32, %arg2: memref<48xi32, #tpu.memory_space<smem>>, %arg3: memref<24xi32, #tpu.memory_space<smem>>) -> (i32, i32) {
    %c0_i32 = arith.constant 0 : i32
    %c0_i32_0 = arith.constant 0 : i32
    return %c0_i32, %arg0 : i32, i32
  }
  func.func @transform_1(%arg0: i32, %arg1: i32, %arg2: memref<48xi32, #tpu.memory_space<smem>>, %arg3: memref<24xi32, #tpu.memory_space<smem>>) -> (i32, i32) {
    %c0_i32 = arith.constant 0 : i32
    %c0_i32_0 = arith.constant 0 : i32
    return %arg1, %c0_i32 : i32, i32
  }
  func.func @transform_2(%arg0: i32, %arg1: i32, %arg2: memref<48xi32, #tpu.memory_space<smem>>, %arg3: memref<24xi32, #tpu.memory_space<smem>>) -> (i32, i32) {
    %c0_i32 = arith.constant 0 : i32
    %c0_i32_0 = arith.constant 0 : i32
    return %arg1, %c0_i32 : i32, i32
  }
  func.func @transform_3(%arg0: i32, %arg1: i32, %arg2: memref<48xi32, #tpu.memory_space<smem>>, %arg3: memref<24xi32, #tpu.memory_space<smem>>) -> (i32, i32) {
    %c0_i32 = arith.constant 0 : i32
    %c0_i32_0 = arith.constant 0 : i32
    return %c0_i32, %arg0 : i32, i32
  }
  func.func @transform_4(%arg0: i32, %arg1: i32, %arg2: memref<48xi32, #tpu.memory_space<smem>>, %arg3: memref<24xi32, #tpu.memory_space<smem>>) -> (i32, i32) {
    %c0_i32 = arith.constant 0 : i32
    %c0_i32_0 = arith.constant 0 : i32
    return %c0_i32, %arg0 : i32, i32
  }
}

</mosaic_0001>

<bundles_post_ra>
// kernel: tpu_custom_call.1
= control target key start
LH: loop header
LB: loop body
LE: loop exit
PB: predicated region body
PF: predicated region fallthrough
CT: control target
= control target key end

     0   :  { %s4510_s0 = inlined_call_operand.vmem [shape: s32[48], index: 0, kind: input, shape index: {}]   ;;  %s4511_s2 = inlined_call_operand.vmem [shape: s32[4,768], index: 2, kind: input, shape index: {}]   ;;  %s4512_s3 = inlined_call_operand.vmem [shape: s32[768,4], index: 3, kind: input, shape index: {}]   ;;  %s4513_s4 = inlined_call_operand.vmem [shape: f32[768,1], index: 4, kind: input, shape index: {}]   ;;  %s4514_s5 = inlined_call_operand.vmem [shape: f32[4,768], index: 5, kind: input, shape index: {}]   ;;  %s4515_s6 = inlined_call_operand.hbm [shape: f32[1,768], index: 6, kind: output, shape index: {}]   ;;  %s4516_s1 = inlined_call_operand.vmem [shape: s32[24], index: 1, kind: input, shape index: {}]  }
   0x1   :  { %4599 = sst [smem:[#allocation123_spill]] %s4511_s2  ;;  %s11_s23 = sshll.u32 %s4510_s0, 4  ;;  %s12_s23 = int_to_ptr.vmem [resolvable:$true] %s11_s23 }
   0x2   :  { %4600 = sst [smem:[#allocation124_spill]] %s4512_s3  ;;  %s15_s26 = sshll.u32 %s4516_s1, 4  ;;  %s16_s26 = int_to_ptr.vmem [resolvable:$true] %s15_s26 }
   0x3   :  { %4601 = sst [smem:[#allocation125_spill]] %s4513_s4  ;;  %s2113_s27 = scalar_lea.vmem %s12_s23, 16 }
   0x4   :  { %4602 = sst [smem:[#allocation126_spill]] %s4514_s5  ;;  %p2114_p0 = scmp.ne.s32.totalorder %s12_s23, %s2113_s27 }
   0x5   :  { %p2118_p1 = scmp.lt.s32.totalorder %s12_s23, %s12_s23  ;;  %p2119_p2 = scmp.lt.s32.totalorder %s2113_s27, %s2113_s27 }
   0x7   :  { %p2120_p3 = por %p2119_p2, %p2118_p1 }
   0x9   :  { %p2121_p4 = pnand %p2120_p3, %p2114_p0 }
   0xb   :  { %2124 = shalt.err (!%p2121_p4)  }
   0xc   :  { %s2233_s28 = smov [#allocation4]   ;;  %s2125_s29 = scalar_lea.vmem %s16_s26, 16 }
   0xd   :  { %14 = dma.vmem_to_smem %s12_s23, 16, %s2233_s28, [#allocation3] }
   0xe   :  { %p2126_p5 = scmp.ne.s32.totalorder %s16_s26, %s2125_s29  ;;  %p2130_p6 = scmp.lt.s32.totalorder %s16_s26, %s16_s26 }
   0xf   :  { %p2131_p7 = scmp.lt.s32.totalorder %s2125_s29, %s2125_s29 }
  0x11   :  { %p2132_p8 = por %p2131_p7, %p2130_p6 }
  0x13   :  { %p2133_p9 = pnand %p2132_p8, %p2126_p5 }
  0x15   :  { %2136 = shalt.err (!%p2133_p9)  }
  0x16   :  { %s2234_s0 = smov [#allocation5]  }
  0x17   :  { %18 = dma.vmem_to_smem %s16_s26, 16, %s2234_s0, [#allocation3] }
  0x18   :  { %2195 = dma.done.wait [#allocation3], 32 }
  0x19   :  { %2196 = vsyncadd [#allocation3], 4294967264 }
  0x1a   :  { %20 = sfence }
  0x1b   :  { %21 = vsyncpa [#allocation7], 0 }
  0x1c   :  { %23 = vsyncpa [#allocation7 + $0x1], 0  ;;  %s2282_s1 = smov 0   ;;  %s2284_s30 = smov 0  }
  0x1d   :  { %s2286_s7 = smov 0   ;;  %s2288_s8 = smov 0  }
  0x1e   :  { %s2290_s9 = smov 0   ;;  %s2292_s10 = smov 0  }
  0x1f   :  { %s2294_s11 = smov 0   ;;  %s2296_s12 = smov 0  }
  0x20 LB: > { %4603 = sst [smem:[#allocation10_spill]] %s2203_s1  ;;  %s1911_s13 = sadd.s32 4294967295, %s2231_s12   ;;  %s2231_s12 = sphi %s2296_s12, %s29_s12   ;;  %s2227_s11 = sphi %s2294_s11, %s5218_s11   ;;  %s2223_s10 = sphi %s2292_s10, %s5214_s10   ;;  %s2219_s9 = sphi %s2290_s9, %s5213_s9   ;;  %s2215_s8 = sphi %s2288_s8, %s5212_s8   ;;  %s2211_s7 = sphi %s2286_s7, %s5211_s7   ;;  %s2207_s30 = sphi %s2284_s30, %s5217_s30   ;;  %s2203_s1 = sphi %s2282_s1, %s5216_s1  }
  0x21   : > { %4604 = sst [smem:[#allocation11_spill]] %s2211_s7  ;;  %s1912_s14 = sadd.s32 4294967294, %s2231_s12  }
  0x22   : > { %4605 = sst [smem:[#allocation12_spill]] %s2223_s10  ;;  %s38_s15 = sadd.s32 1, %s2223_s10 }
  0x23   : > { %4606 = sst [smem:[#allocation13_spill]] %s2227_s11  ;;  %p39_p10 = scmp.ge.s32.totalorder %s38_s15, 3 }
  0x24   : > { %4607 = sst [smem:[#allocation14_spill]] %s2231_s12  ;;  %s41_s16 = sadd.s32 1, %s2227_s11 }
  0x25   : > { %p162_p11 = scmp.ne.s32.totalorder %s2211_s7, %s2207_s30  ;;  %p163_p12 = scmp.eq.s32.totalorder %s1911_s13, 17 }
  0x26   : > { %s5220_s15 = smov (%p39_p10, %s38_s15), 0  ;;  %s5222_s16 = smov (!%p39_p10, %s41_s16), %s2227_s11 }
  0x27   : > { %4608 = sst [smem:[#allocation15_spill]] %s5220_s15  ;;  %p2331_p13 = por %p163_p12, %p162_p11 }
  0x28   : > { %p168_p0 = scmp.ne.s32.totalorder %s2207_s30, %s2203_s1  ;;  %p43_p1 = scmp.ge.s32.totalorder %s5222_s16, 6 }
  0x29   : > { %s4609_s17 = scalar_select %p2331_p13, 1, 0 }
  0x2a   : > { %p169_p2 = scmp.eq.s32.totalorder %s1912_s14, 17  ;;  %p1915_p3 = scmp.ge.s32.totalorder %s2231_s12, 1 }
  0x2b   : > { %p219_p4 = scmp.lt.s32.totalorder %s2231_s12, 19  ;;  %s5224_s16 = smov (%p43_p1, %s5222_s16), 0 }
  0x2c   : > { %4610 = sst [smem:[#allocation16_spill]] %s5224_s16  ;;  %p2341_p5 = por %p169_p2, %p168_p0 }
  0x2d   : > { %p220_p6 = pnand %p1915_p3, %p219_p4  ;;  %s149_s19 = ssub.s32 %s2227_s11, %s5224_s16 }
  0x2e   : > { %s4611_s18 = scalar_select %p2341_p5, 1, 0 }
  0x2f   : > { %s152_s20 = sadd.s32 1, %s2211_s7  ;;  %p150_p7 = scmp.eq.s32.totalorder %s149_s19, 0 }
  0x30   : > { %4612 = sst [smem:[#allocation17_spill]] %s4611_s18  ;;  %223 = sbr.rel (%p220_p6) target bundleno = 689 (0x2b1), region = 36 }
  0x31   : > { %s2349_s21 = scalar_select %p150_p7, %s2211_s7, %s152_s20  }
  0x32   : > { %p257_p8 = scmp.lt.s32.totalorder (!%p220_p6), %s2219_s9, 5  ;;  %s1917_s23 = sshll.u32 (!%p220_p6), %s2215_s8, 5 }
  0x33   : > { %4613 = sst [smem:[#allocation18_spill]] %s2349_s21  ;;  %p262_p9 = scmp.lt.s32.totalorder (!%p220_p6), %s1917_s23, 95 }
  0x34   : > { %s4614_s2 = sld [smem:[#allocation123_spill]] (!%p220_p6)  ;;  %s4618_s26 = sand.u32 (!%p220_p6), 1, %s2207_s30  }
  0x35   : > { %s258_s24 = scalar_select %p257_p8, %s2219_s9, 5 }
  0x36   : > { %s4615_s5 = sld [smem:[#allocation126_spill]]  ;;  %s5226_s23 = smov (!%p262_p9, %s1917_s23), 95 }
  0x37   : > { %s1916_s25 = sshll.u32 %s258_s24, 2  ;;  %s1918_s14 = sshll.u32 %s5226_s23, 3 }
  0x38   : > { %s4616_s3 = sld [smem:[#allocation124_spill]]  ;;  %s2377_s27 = scalar_lea.vmem [#allocation6], %s4618_s26 }
  0x39   : > { %s4617_s4 = sld [smem:[#allocation125_spill]]  ;;  %p1922_p10 = scmp.ne.s32.totalorder %s2215_s8, 0 }
  0x3a   : > { %s2358_s28 = scalar_lea.vmem %s4614_s2, %s1916_s25 }
  0x3b   : > { %280 = sbr.rel (%p1922_p10) target bundleno = 66 (0x42), region = 40 }
  0x3c   : > { %s2363_s13 = scalar_lea.vmem %s4615_s5, %s1916_s25 }
  0x3e   : > { %s2368_s22 = scalar_lea.vmem %s4616_s3, %s1918_s14 }
  0x3f   : > { %s2373_s24 = scalar_lea.vmem %s4617_s4, %s1918_s14 }
  0x40   : > { %v2235_v0 = vmov 0.0  }
  0x41   : > { %281 = vst [vmem:[#allocation2] sm:$0x1] %v2235_v0 }
  0x42 PF: > { %s2381_s23 = sshll.u32 %s2219_s9, 3  ;;  %s2384_s15 = sshll.u32 %s2215_s8, 3 }
  0x43   : > { %s284_s16 = sadd.s32 1, %s2381_s23  ;;  %s286_s25 = sld [smem:[#allocation5 + %s2384_s15]] }
  0x44   : > { %s285_s29 = sld [smem:[#allocation4 + %s284_s16]]  ;;  %s288_s0 = sadd.s32 1, %s2384_s15 }
  0x45   : > { %s289_s14 = sld [smem:[#allocation5 + %s288_s0]]  ;;  %s294_s19 = sadd.s32 3, %s2381_s23 }
  0x46   : > { %s290_s20 = sld [smem:[#allocation4 + %s2381_s23]]  ;;  %s297_s26 = sadd.s32 2, %s2384_s15 }
  0x47   : > { %s295_s2 = sld [smem:[#allocation4 + %s294_s19]]  ;;  %s302_s3 = sadd.s32 3, %s2384_s15 }
  0x48   : > { %s298_s4 = sld [smem:[#allocation5 + %s297_s26]]  ;;  %s305_s5 = sadd.s32 2, %s2381_s23 }
  0x49   : > { %s303_s11 = sld [smem:[#allocation5 + %s302_s3]]  ;;  %s310_s10 = sadd.s32 5, %s2381_s23 }
  0x4a   : > { %p287_p11 = scmp.ge.s32.totalorder %s285_s29, %s286_s25  ;;  %s306_s21 = sld [smem:[#allocation4 + %s305_s5]] }
  0x4b   : > { %s311_s7 = sld [smem:[#allocation4 + %s310_s10]]  ;;  %s313_s18 = sadd.s32 4, %s2384_s15 }
  0x4c   : > { %p291_p12 = scmp.ge.s32.totalorder %s289_s14, %s290_s20  ;;  %s314_s16 = sld [smem:[#allocation5 + %s313_s18]] }
  0x4d   : > { %s296_s1 = sadd.s32 1, %s295_s2  ;;  %s318_s0 = sadd.s32 5, %s2384_s15 }
  0x4e   : > { %p292_p0 = pnand %p291_p12, %p287_p11  ;;  %p299_p1 = scmp.ge.s32.totalorder %s296_s1, %s298_s4 }
  0x4f   : > { %s304_s12 = sadd.s32 1, %s303_s11  ;;  %s319_s19 = sld [smem:[#allocation5 + %s318_s0]] }
  0x50   : > { %p293_p2 = pneg %p292_p0  ;;  %p307_p3 = scmp.ge.s32.totalorder %s304_s12, %s306_s21 }
  0x51   : > { %s312_s3 = sadd.s32 1, %s311_s7  ;;  %s321_s26 = sadd.s32 4, %s2381_s23 }
  0x52   : > { %p300_p4 = pnand %p299_p1, %p293_p2  ;;  %p2398_p6 = scmp.ge.s32.totalorder %s312_s3, %s314_s16 }
  0x53   : > { %s322_s10 = sld [smem:[#allocation4 + %s321_s26]]  ;;  %s326_s2 = sadd.s32 7, %s2381_s23 }
  0x54   : > { %p301_p7 = pneg %p300_p4  ;;  %s327_s18 = sld [smem:[#allocation4 + %s326_s2]] }
  0x55   : > { %s320_s25 = sadd.s32 1, %s319_s19  ;;  %s329_s4 = sadd.s32 6, %s2384_s15 }
  0x56   : > { %p308_p8 = pnand %p307_p3, %p301_p7  ;;  %s330_s1 = sld [smem:[#allocation5 + %s329_s4]] }
  0x57   : > { %s334_s11 = sadd.s32 7, %s2384_s15  ;;  %s337_s29 = sadd.s32 6, %s2381_s23 }
  0x58   : > { %p309_p9 = pneg %p308_p8  ;;  %s335_s12 = sld [smem:[#allocation5 + %s334_s11]] }
  0x59   : > { %p323_p10 = scmp.ge.s32.totalorder %s320_s25, %s322_s10  ;;  %s338_s7 = sld [smem:[#allocation4 + %s337_s29]] }
  0x5a   : > { %p316_p11 = pnand %p2398_p6, %p309_p9  ;;  %s328_s21 = sadd.s32 1, %s327_s18 }
  0x5c   : > { %p317_p12 = pneg %p316_p11  ;;  %p331_p1 = scmp.ge.s32.totalorder %s328_s21, %s330_s1 }
  0x5e   : > { %p324_p0 = pnand %p323_p10, %p317_p12  ;;  %s336_s14 = sadd.s32 1, %s335_s12 }
  0x5f   : > { %p339_p5 = scmp.ge.s32.totalorder %s336_s14, %s338_s7 }
  0x60   : > { %p325_p2 = pneg %p324_p0 }
  0x62   : > { %p332_p4 = pnand %p331_p1, %p325_p2 }
  0x64   : > { %p333_p13 = pneg %p332_p4 }
  0x66   : > { %p340_p3 = pnand %p339_p5, %p333_p13 }
  0x68   : > { %343 = sbr.rel (%p340_p3) target bundleno = 622 (0x26e), region = 44 }
  0x6d   : > { %v2409_v1 = vld [vmem:[%s2368_s22 + $0x10] sm:$0xff]  ;;  %v2412_v2 = vld [vmem:[%s2368_s22] sm:$0xff]  ;;  %v2236_v3 = vmov 1   ;;  %v2417_v4 = vld [vmem:[%s2368_s22 + $0x18] sm:$0xff]  ;;  %v2237_v34 = vmov 2   ;;  %v2238_v39 = vmov 3  }
  0x6e   : > { %2104 = vset.pattern.permute.xlu1 %v2236_v3  ;;  %2103 = vset.pattern.permute.xlu0 %v2236_v3  ;;  %v2420_v5 = vld [vmem:[%s2368_s22 + $0x8] sm:$0xff]  ;;  %v2428_v7 = vld [vmem:[%s2368_s22 + $0x20] sm:$0xff]  ;;  %v2433_v8 = vld [vmem:[%s2368_s22 + $0x38] sm:$0xff] }
  0x6f   : > { %416 = vperm.xlu1 %2104, %v2409_v1   ;;  %410 = vperm.xlu0 %2103, %v2412_v2   ;;  %v2425_v6 = vld [vmem:[%s2368_s22 + $0x28] sm:$0xff]  ;;  %v2436_v9 = vld [vmem:[%s2368_s22 + $0x30] sm:$0xff]  ;;  %v2444_v11 = vld [vmem:[%s2368_s22 + $0x40] sm:$0xff] }
  0x70   : > { %v2441_v10 = vld [vmem:[%s2368_s22 + $0x48] sm:$0xff]  ;;  %v2449_v12 = vld [vmem:[%s2368_s22 + $0x58] sm:$0xff]  ;;  %v2452_v13 = vld [vmem:[%s2368_s22 + $0x50] sm:$0xff] }
  0x71   : > { %v2457_v14 = vld [vmem:[%s2368_s22 + $0x68] sm:$0xff]  ;;  %v2460_v15 = vld [vmem:[%s2368_s22 + $0x60] sm:$0xff]  ;;  %v2465_v16 = vld [vmem:[%s2368_s22 + $0x78] sm:$0xff] }
  0x72   : > { %v2468_v17 = vld [vmem:[%s2368_s22 + $0x70] sm:$0xff]  ;;  %v2473_v18 = vld [vmem:[%s2368_s22 + $0x88] sm:$0xff]  ;;  %v2476_v19 = vld [vmem:[%s2368_s22 + $0x80] sm:$0xff] }
  0x73   : > { %419 = vperm.xlu1 %2104, %v2417_v4   ;;  %413 = vperm.xlu0 %2103, %v2420_v5   ;;  %v2481_v20 = vld [vmem:[%s2368_s22 + $0x98] sm:$0xff]  ;;  %v2484_v21 = vld [vmem:[%s2368_s22 + $0x90] sm:$0xff]  ;;  %v2489_v22 = vld [vmem:[%s2368_s22 + $0xa8] sm:$0xff] }
  0x74   : > { %v2492_v23 = vld [vmem:[%s2368_s22 + $0xa0] sm:$0xff]  ;;  %v2497_v24 = vld [vmem:[%s2368_s22 + $0xb8] sm:$0xff]  ;;  %v2500_v25 = vld [vmem:[%s2368_s22 + $0xb0] sm:$0xff] }
  0x75   : > { %v2505_v26 = vld [vmem:[%s2368_s22 + $0xc8] sm:$0xff]  ;;  %v2508_v27 = vld [vmem:[%s2368_s22 + $0xc0] sm:$0xff]  ;;  %v2513_v28 = vld [vmem:[%s2368_s22 + $0xd8] sm:$0xff] }
  0x76   : > { %v2516_v29 = vld [vmem:[%s2368_s22 + $0xd0] sm:$0xff]  ;;  %v2521_v30 = vld [vmem:[%s2368_s22 + $0xe8] sm:$0xff]  ;;  %v2524_v31 = vld [vmem:[%s2368_s22 + $0xe0] sm:$0xff] }
  0x77   : > { %425 = vperm.xlu1 %2104, %v2425_v6   ;;  %422 = vperm.xlu0 %2103, %v2428_v7   ;;  %v2529_v32 = vld [vmem:[%s2368_s22 + $0xf8] sm:$0xff]  ;;  %v2532_v33 = vld [vmem:[%s2368_s22 + $0xf0] sm:$0xff] }
  0x7b   : > { %431 = vperm.xlu1 %2104, %v2433_v8   ;;  %428 = vperm.xlu0 %2103, %v2436_v9  }
  0x7f   : > { %437 = vperm.xlu1 %2104, %v2441_v10   ;;  %434 = vperm.xlu0 %2103, %v2444_v11  }
  0x83   : > { %443 = vperm.xlu1 %2104, %v2449_v12   ;;  %440 = vperm.xlu0 %2103, %v2452_v13  }
  0x87   : > { %449 = vperm.xlu1 %2104, %v2457_v14   ;;  %446 = vperm.xlu0 %2103, %v2460_v15  }
  0x8b   : > { %455 = vperm.xlu1 %2104, %v2465_v16   ;;  %452 = vperm.xlu0 %2103, %v2468_v17  }
  0x8f   : > { %461 = vperm.xlu1 %2104, %v2473_v18   ;;  %458 = vperm.xlu0 %2103, %v2476_v19  }
  0x93   : > { %467 = vperm.xlu1 %2104, %v2481_v20   ;;  %464 = vperm.xlu0 %2103, %v2484_v21  }
  0x97   : > { %473 = vperm.xlu1 %2104, %v2489_v22   ;;  %470 = vperm.xlu0 %2103, %v2492_v23  }
  0x9b   : > { %479 = vperm.xlu1 %2104, %v2497_v24   ;;  %476 = vperm.xlu0 %2103, %v2500_v25  }
  0x9f   : > { %485 = vperm.xlu1 %2104, %v2505_v26   ;;  %482 = vperm.xlu0 %2103, %v2508_v27  }
  0xa3   : > { %491 = vperm.xlu1 %2104, %v2513_v28   ;;  %488 = vperm.xlu0 %2103, %v2516_v29  }
  0xa7   : > { %497 = vperm.xlu1 %2104, %v2521_v30   ;;  %494 = vperm.xlu0 %2103, %v2524_v31  }
  0xab   : > { %503 = vperm.xlu1 %2104, %v2529_v32   ;;  %500 = vperm.xlu0 %2103, %v2532_v33  }
  0xaf   : > { %2106 = vset.pattern.permute.xlu1 %v2237_v34  ;;  %2105 = vset.pattern.permute.xlu0 %v2237_v34 }
  0xb0   : > { %641 = vperm.xlu1 %2106, %v2420_v5   ;;  %638 = vperm.xlu0 %2105, %v2412_v2  }
  0xb4   : > { %644 = vperm.xlu1 %2106, %v2409_v1   ;;  %647 = vperm.xlu0 %2105, %v2417_v4  }
  0xb8   : > { %650 = vperm.xlu1 %2106, %v2428_v7   ;;  %653 = vperm.xlu0 %2105, %v2425_v6  }
  0xbc   : > { %656 = vperm.xlu1 %2106, %v2436_v9   ;;  %659 = vperm.xlu0 %2105, %v2433_v8  }
  0xc0   : > { %662 = vperm.xlu1 %2106, %v2444_v11   ;;  %665 = vperm.xlu0 %2105, %v2441_v10  }
  0xc4   : > { %668 = vperm.xlu1 %2106, %v2452_v13   ;;  %671 = vperm.xlu0 %2105, %v2449_v12  }
  0xc8   : > { %674 = vperm.xlu1 %2106, %v2460_v15   ;;  %677 = vperm.xlu0 %2105, %v2457_v14  }
  0xcc   : > { %680 = vperm.xlu1 %2106, %v2468_v17   ;;  %683 = vperm.xlu0 %2105, %v2465_v16  }
  0xd0   : > { %686 = vperm.xlu1 %2106, %v2476_v19   ;;  %689 = vperm.xlu0 %2105, %v2473_v18  }
  0xd4   : > { %692 = vperm.xlu1 %2106, %v2484_v21   ;;  %695 = vperm.xlu0 %2105, %v2481_v20  }
  0xd8   : > { %698 = vperm.xlu1 %2106, %v2492_v23   ;;  %701 = vperm.xlu0 %2105, %v2489_v22  }
  0xdc   : > { %704 = vperm.xlu1 %2106, %v2500_v25   ;;  %707 = vperm.xlu0 %2105, %v2497_v24  }
  0xe0   : > { %710 = vperm.xlu1 %2106, %v2508_v27   ;;  %713 = vperm.xlu0 %2105, %v2505_v26  }
  0xe4   : > { %716 = vperm.xlu1 %2106, %v2516_v29   ;;  %719 = vperm.xlu0 %2105, %v2513_v28  }
  0xe8   : > { %722 = vperm.xlu1 %2106, %v2524_v31   ;;  %725 = vperm.xlu0 %2105, %v2521_v30  }
  0xea   : > { %v2566_v35 = vpop.permute.xlu1 %416  ;;  %v2568_v36 = vpop.permute.xlu0 %410 }
  0xec   : > { %728 = vperm.xlu1 %2106, %v2532_v33   ;;  %731 = vperm.xlu0 %2105, %v2529_v32  }
  0xee   : > { %v2572_v37 = vpop.permute.xlu1 %419  ;;  %v2574_v38 = vpop.permute.xlu0 %413 }
  0xf0   : > { %2107 = vset.pattern.permute.xlu1 %v2238_v39  ;;  %2108 = vset.pattern.permute.xlu0 %v2238_v39 }
  0xf1   : > { %866 = vperm.xlu1 %2107, %v2412_v2   ;;  %869 = vperm.xlu0 %2108, %v2420_v5  }
  0xf2   : > { %v2578_v40 = vpop.permute.xlu1 %425  ;;  %v2580_v41 = vpop.permute.xlu0 %422 }
  0xf5   : > { %872 = vperm.xlu1 %2107, %v2409_v1   ;;  %878 = vperm.xlu0 %2108, %v2428_v7  }
  0xf6   : > { %v2584_v42 = vpop.permute.xlu1 %431  ;;  %v2586_v43 = vpop.permute.xlu0 %428 }
  0xf9   : > { %875 = vperm.xlu1 %2107, %v2417_v4   ;;  %884 = vperm.xlu0 %2108, %v2436_v9  }
  0xfa   : > { %v2590_v44 = vpop.permute.xlu1 %437  ;;  %v2592_v45 = vpop.permute.xlu0 %434 }
  0xfd   : > { %881 = vperm.xlu1 %2107, %v2425_v6   ;;  %890 = vperm.xlu0 %2108, %v2444_v11  }
  0xfe   : > { %v2596_v46 = vpop.permute.xlu1 %443  ;;  %v2598_v47 = vpop.permute.xlu0 %440 }
 0x101   : > { %887 = vperm.xlu1 %2107, %v2433_v8   ;;  %896 = vperm.xlu0 %2108, %v2452_v13  }
 0x102   : > { %v2602_v48 = vpop.permute.xlu1 %449  ;;  %v2604_v49 = vpop.permute.xlu0 %446 }
 0x105   : > { %893 = vperm.xlu1 %2107, %v2441_v10   ;;  %902 = vperm.xlu0 %2108, %v2460_v15  }
 0x106   : > { %v2608_v50 = vpop.permute.xlu1 %455  ;;  %v2610_v51 = vpop.permute.xlu0 %452 }
 0x109   : > { %899 = vperm.xlu1 %2107, %v2449_v12   ;;  %908 = vperm.xlu0 %2108, %v2468_v17  }
 0x10a   : > { %v2614_v52 = vpop.permute.xlu1 %461  ;;  %v2616_v53 = vpop.permute.xlu0 %458 }
 0x10d   : > { %905 = vperm.xlu1 %2107, %v2457_v14   ;;  %914 = vperm.xlu0 %2108, %v2476_v19  }
 0x10e   : > { %v2620_v54 = vpop.permute.xlu1 %467  ;;  %v2622_v55 = vpop.permute.xlu0 %464 }
 0x111   : > { %911 = vperm.xlu1 %2107, %v2465_v16   ;;  %920 = vperm.xlu0 %2108, %v2484_v21  }
 0x112   : > { %v2626_v56 = vpop.permute.xlu1 %473  ;;  %v2628_v57 = vpop.permute.xlu0 %470 }
 0x115   : > { %917 = vperm.xlu1 %2107, %v2473_v18   ;;  %926 = vperm.xlu0 %2108, %v2492_v23  }
 0x116   : > { %v2632_v58 = vpop.permute.xlu1 %479  ;;  %v2634_v59 = vpop.permute.xlu0 %476 }
 0x117   : > { %4620 = vst [vmem:[#allocation19_spill] sm:$0xff] %v2634_v59 }
 0x119   : > { %923 = vperm.xlu1 %2107, %v2481_v20   ;;  %932 = vperm.xlu0 %2108, %v2500_v25  }
 0x11a   : > { %v2638_v60 = vpop.permute.xlu1 %485  ;;  %v2640_v61 = vpop.permute.xlu0 %482 }
 0x11b   : > { %4621 = vst [vmem:[#allocation20_spill] sm:$0xff] %v2638_v60  ;;  %4622 = vst [vmem:[#allocation21_spill] sm:$0xff] %v2640_v61  ;;  %v2239_v61 = vmov 0  }
 0x11d   : > { %929 = vperm.xlu1 %2107, %v2489_v22   ;;  %938 = vperm.xlu0 %2108, %v2508_v27  }
 0x11e   : > { %v2644_v62 = vpop.permute.xlu1 %491  ;;  %v2646_v63 = vpop.permute.xlu0 %488 }
 0x11f   : > { %4623 = vst [vmem:[#allocation22_spill] sm:$0xff] %v2644_v62  ;;  %4624 = vst [vmem:[#allocation23_spill] sm:$0xff] %v2646_v63 }
 0x121   : > { %935 = vperm.xlu1 %2107, %v2497_v24   ;;  %944 = vperm.xlu0 %2108, %v2516_v29  }
 0x122   : > { %v2650_v0 = vpop.permute.xlu1 %497  ;;  %v2652_v3 = vpop.permute.xlu0 %494 }
 0x123   : > { %4625 = vst [vmem:[#allocation24_spill] sm:$0xff] %v2652_v3 }
 0x125   : > { %941 = vperm.xlu1 %2107, %v2505_v26   ;;  %950 = vperm.xlu0 %2108, %v2524_v31  }
 0x126   : > { %v2656_v34 = vpop.permute.xlu1 %503  ;;  %v2658_v39 = vpop.permute.xlu0 %500 }
 0x127   : > { %4626 = vst [vmem:[#allocation25_spill] sm:$0xff] %v2658_v39 }
 0x129   : > { %947 = vperm.xlu1 %2107, %v2513_v28   ;;  %956 = vperm.xlu0 %2108, %v2532_v33  }
 0x12b   : > { %v2662_v63 = vpop.permute.xlu1 %641  ;;  %v2664_v62 = vpop.permute.xlu0 %638 }
 0x12c   : > { %4627 = vst [vmem:[#allocation26_spill] sm:$0xff] %v2662_v63 }
 0x12d   : > { %953 = vperm.xlu1 %2107, %v2521_v30   ;;  %2109 = vset.pattern.permute.xlu0 %v2239_v61 }
 0x12e   : > { %1098 = vperm.xlu0 %2109, %v2412_v2  }
 0x12f   : > { %v2668_v3 = vpop.permute.xlu1 %644  ;;  %v2670_v60 = vpop.permute.xlu0 %647 }
 0x130   : > { %4628 = vst [vmem:[#allocation27_spill] sm:$0xff] %v2670_v60 }
 0x131   : > { %959 = vperm.xlu1 %2107, %v2529_v32  }
 0x132   : > { %1107 = vperm.xlu0 %2109, %v2417_v4  }
 0x133   : > { %v2674_v39 = vpop.permute.xlu1 %650  ;;  %v2676_v59 = vpop.permute.xlu0 %653 }
 0x135   : > { %2110 = vset.pattern.permute.xlu1 %v2239_v61 }
 0x136   : > { %1101 = vperm.xlu1 %2110, %v2420_v5   ;;  %1113 = vperm.xlu0 %2109, %v2425_v6  }
 0x137   : > { %v2680_v63 = vpop.permute.xlu1 %656  ;;  %v2682_v2 = vpop.permute.xlu0 %659 }
 0x13a   : > { %1104 = vperm.xlu1 %2110, %v2409_v1   ;;  %1119 = vperm.xlu0 %2109, %v2433_v8  }
 0x13b   : > { %v2686_v60 = vpop.permute.xlu1 %662  ;;  %v2688_v4 = vpop.permute.xlu0 %665 }
 0x13e   : > { %1110 = vperm.xlu1 %2110, %v2428_v7   ;;  %1125 = vperm.xlu0 %2109, %v2441_v10  }
 0x13f   : > { %v2692_v61 = vpop.permute.xlu1 %668  ;;  %v2694_v5 = vpop.permute.xlu0 %671 }
 0x142   : > { %1116 = vperm.xlu1 %2110, %v2436_v9   ;;  %1131 = vperm.xlu0 %2109, %v2449_v12  }
 0x143   : > { %v2698_v6 = vpop.permute.xlu1 %674  ;;  %v2700_v1 = vpop.permute.xlu0 %677 }
 0x144   : > { %4629 = vst [vmem:[#allocation28_spill] sm:$0xff] %v2700_v1 }
 0x146   : > { %1122 = vperm.xlu1 %2110, %v2444_v11   ;;  %1137 = vperm.xlu0 %2109, %v2457_v14  }
 0x147   : > { %v2704_v8 = vpop.permute.xlu1 %680  ;;  %v2706_v7 = vpop.permute.xlu0 %683 }
 0x148   : > { %4630 = vst [vmem:[#allocation29_spill] sm:$0xff] %v2704_v8  ;;  %4631 = vst [vmem:[#allocation30_spill] sm:$0xff] %v2706_v7 }
 0x14a   : > { %1128 = vperm.xlu1 %2110, %v2452_v13   ;;  %1143 = vperm.xlu0 %2109, %v2465_v16  }
 0x14b   : > { %v2710_v10 = vpop.permute.xlu1 %686  ;;  %v2712_v9 = vpop.permute.xlu0 %689 }
 0x14c   : > { %4632 = vst [vmem:[#allocation31_spill] sm:$0xff] %v2710_v10  ;;  %4633 = vst [vmem:[#allocation32_spill] sm:$0xff] %v2712_v9 }
 0x14e   : > { %1134 = vperm.xlu1 %2110, %v2460_v15   ;;  %1149 = vperm.xlu0 %2109, %v2473_v18  }
 0x14f   : > { %v2716_v12 = vpop.permute.xlu1 %692  ;;  %v2718_v11 = vpop.permute.xlu0 %695 }
 0x150   : > { %4634 = vst [vmem:[#allocation33_spill] sm:$0xff] %v2716_v12  ;;  %4635 = vst [vmem:[#allocation34_spill] sm:$0xff] %v2718_v11 }
 0x152   : > { %1140 = vperm.xlu1 %2110, %v2468_v17   ;;  %1155 = vperm.xlu0 %2109, %v2481_v20  }
 0x153   : > { %v2722_v14 = vpop.permute.xlu1 %698  ;;  %v2724_v13 = vpop.permute.xlu0 %701 }
 0x154   : > { %4636 = vst [vmem:[#allocation35_spill] sm:$0xff] %v2722_v14  ;;  %4637 = vst [vmem:[#allocation36_spill] sm:$0xff] %v2724_v13 }
 0x156   : > { %1146 = vperm.xlu1 %2110, %v2476_v19   ;;  %1161 = vperm.xlu0 %2109, %v2489_v22  }
 0x157   : > { %v2728_v15 = vpop.permute.xlu1 %704  ;;  %v2730_v16 = vpop.permute.xlu0 %707 }
 0x158   : > { %4638 = vst [vmem:[#allocation37_spill] sm:$0xff] %v2728_v15  ;;  %4639 = vst [vmem:[#allocation38_spill] sm:$0xff] %v2730_v16  ;;  %v400_v15 = vld [vmem:[%s2373_s24 + $0xb8] sm:$0xff] }
 0x15a   : > { %1152 = vperm.xlu1 %2110, %v2484_v21   ;;  %1167 = vperm.xlu0 %2109, %v2497_v24   ;;  %v377_v24 = vld [vmem:[%s2373_s24] sm:$0xff] }
 0x15b   : > { %v2734_v17 = vpop.permute.xlu1 %710  ;;  %v2736_v18 = vpop.permute.xlu0 %713 }
 0x15c   : > { %4640 = vst [vmem:[#allocation39_spill] sm:$0xff] %v2734_v17  ;;  %4641 = vst [vmem:[#allocation40_spill] sm:$0xff] %v2736_v18 }
 0x15e   : > { %1158 = vperm.xlu1 %2110, %v2492_v23   ;;  %1173 = vperm.xlu0 %2109, %v2505_v26  }
 0x15f   : > { %v2740_v19 = vpop.permute.xlu1 %716  ;;  %v2742_v20 = vpop.permute.xlu0 %719 }
 0x160   : > { %4642 = vst [vmem:[#allocation41_spill] sm:$0xff] %v2740_v19  ;;  %4643 = vst [vmem:[#allocation42_spill] sm:$0xff] %v2742_v20  ;;  %v379_v20 = vld [vmem:[%s2373_s24 + $0x10] sm:$0xff] }
 0x162   : > { %1164 = vperm.xlu1 %2110, %v2500_v25   ;;  %1179 = vperm.xlu0 %2109, %v2513_v28   ;;  %v381_v25 = vld [vmem:[%s2373_s24 + $0x20] sm:$0xff] }
 0x163   : > { %v2746_v21 = vpop.permute.xlu1 %722  ;;  %v2748_v22 = vpop.permute.xlu0 %725 }
 0x164   : > { %4644 = vst [vmem:[#allocation43_spill] sm:$0xff] %v2746_v21 }
 0x166   : > { %1170 = vperm.xlu1 %2110, %v2508_v27   ;;  %1547 = vperm.xlu0 %2109, %v377_v24   ;;  %v378_v27 = vld [vmem:[%s2373_s24 + $0x8] sm:$0xff]  ;;  %v383_v24 = vld [vmem:[%s2373_s24 + $0x30] sm:$0xff] }
 0x167   : > { %v2752_v23 = vpop.permute.xlu1 %728  ;;  %v2754_v26 = vpop.permute.xlu0 %731 }
 0x168   : > { %4645 = vst [vmem:[#allocation44_spill] sm:$0xff] %v2752_v23 }
 0x16a   : > { %1176 = vperm.xlu1 %2110, %v2516_v29   ;;  %1557 = vperm.xlu0 %2109, %v379_v20   ;;  %v380_v29 = vld [vmem:[%s2373_s24 + $0x18] sm:$0xff]  ;;  %v385_v20 = vld [vmem:[%s2373_s24 + $0x40] sm:$0xff] }
 0x16c   : > { %v2759_v28 = vpop.permute.xlu1 %866  ;;  %v2761_v21 = vpop.permute.xlu0 %869 }
 0x16d   : > { %4646 = vst [vmem:[#allocation45_spill] sm:$0xff] %v2759_v28  ;;  %4647 = vst [vmem:[#allocation46_spill] sm:$0xff] %v2761_v21 }
 0x16e   : > { %1182 = vperm.xlu1 %2110, %v2524_v31   ;;  %1567 = vperm.xlu0 %2109, %v381_v25   ;;  %v382_v31 = vld [vmem:[%s2373_s24 + $0x28] sm:$0xff]  ;;  %v387_v25 = vld [vmem:[%s2373_s24 + $0x50] sm:$0xff] }
 0x170   : > { %v2766_v23 = vpop.permute.xlu1 %872  ;;  %v2768_v19 = vpop.permute.xlu0 %878 }
 0x171   : > { %4648 = vst [vmem:[#allocation47_spill] sm:$0xff] %v2766_v23  ;;  %4649 = vst [vmem:[#allocation48_spill] sm:$0xff] %v2768_v19 }
 0x172   : > { %1552 = vperm.xlu1 %2110, %v378_v27   ;;  %1577 = vperm.xlu0 %2109, %v383_v24   ;;  %v384_v27 = vld [vmem:[%s2373_s24 + $0x38] sm:$0xff]  ;;  %v389_v24 = vld [vmem:[%s2373_s24 + $0x60] sm:$0xff] }
 0x174   : > { %v2772_v18 = vpop.permute.xlu1 %875  ;;  %v2774_v21 = vpop.permute.xlu0 %884 }
 0x175   : > { %4650 = vst [vmem:[#allocation49_spill] sm:$0xff] %v2772_v18  ;;  %4651 = vst [vmem:[#allocation50_spill] sm:$0xff] %v2774_v21 }
 0x176   : > { %1562 = vperm.xlu1 %2110, %v380_v29   ;;  %1587 = vperm.xlu0 %2109, %v385_v20   ;;  %v386_v29 = vld [vmem:[%s2373_s24 + $0x48] sm:$0xff]  ;;  %v391_v20 = vld [vmem:[%s2373_s24 + $0x70] sm:$0xff] }
 0x178   : > { %v2778_v17 = vpop.permute.xlu1 %881  ;;  %v2780_v23 = vpop.permute.xlu0 %890 }
 0x179   : > { %4652 = vst [vmem:[#allocation51_spill] sm:$0xff] %v2778_v17  ;;  %4653 = vst [vmem:[#allocation52_spill] sm:$0xff] %v2780_v23 }
 0x17a   : > { %1572 = vperm.xlu1 %2110, %v382_v31   ;;  %1597 = vperm.xlu0 %2109, %v387_v25   ;;  %v388_v31 = vld [vmem:[%s2373_s24 + $0x58] sm:$0xff]  ;;  %v393_v25 = vld [vmem:[%s2373_s24 + $0x80] sm:$0xff] }
 0x17c   : > { %v2784_v19 = vpop.permute.xlu1 %887  ;;  %v2786_v16 = vpop.permute.xlu0 %896 }
 0x17d   : > { %4654 = vst [vmem:[#allocation53_spill] sm:$0xff] %v2784_v19  ;;  %4655 = vst [vmem:[#allocation54_spill] sm:$0xff] %v2786_v16 }
 0x17e   : > { %1582 = vperm.xlu1 %2110, %v384_v27   ;;  %1607 = vperm.xlu0 %2109, %v389_v24   ;;  %v390_v27 = vld [vmem:[%s2373_s24 + $0x68] sm:$0xff]  ;;  %v395_v24 = vld [vmem:[%s2373_s24 + $0x90] sm:$0xff] }
 0x180   : > { %v2790_v21 = vpop.permute.xlu1 %893  ;;  %v2792_v17 = vpop.permute.xlu0 %902 }
 0x181   : > { %4656 = vst [vmem:[#allocation55_spill] sm:$0xff] %v2790_v21  ;;  %4657 = vst [vmem:[#allocation56_spill] sm:$0xff] %v2792_v17 }
 0x182   : > { %1592 = vperm.xlu1 %2110, %v386_v29   ;;  %1617 = vperm.xlu0 %2109, %v391_v20   ;;  %v392_v29 = vld [vmem:[%s2373_s24 + $0x78] sm:$0xff]  ;;  %v397_v20 = vld [vmem:[%s2373_s24 + $0xa0] sm:$0xff] }
 0x184   : > { %v2796_v23 = vpop.permute.xlu1 %899  ;;  %v2798_v19 = vpop.permute.xlu0 %908 }
 0x185   : > { %4658 = vst [vmem:[#allocation57_spill] sm:$0xff] %v2796_v23  ;;  %4659 = vst [vmem:[#allocation58_spill] sm:$0xff] %v2798_v19 }
 0x186   : > { %1602 = vperm.xlu1 %2110, %v388_v31   ;;  %1627 = vperm.xlu0 %2109, %v393_v25   ;;  %v394_v31 = vld [vmem:[%s2373_s24 + $0x88] sm:$0xff]  ;;  %v399_v25 = vld [vmem:[%s2373_s24 + $0xb0] sm:$0xff] }
 0x188   : > { %v2802_v16 = vpop.permute.xlu1 %905  ;;  %v2804_v21 = vpop.permute.xlu0 %914 }
 0x189   : > { %4660 = vst [vmem:[#allocation59_spill] sm:$0xff] %v2802_v16  ;;  %4661 = vst [vmem:[#allocation60_spill] sm:$0xff] %v2804_v21  ;;  %v401_v21 = vld [vmem:[%s2373_s24 + $0xc0] sm:$0xff] }
 0x18a   : > { %1612 = vperm.xlu1 %2110, %v390_v27   ;;  %1637 = vperm.xlu0 %2109, %v395_v24   ;;  %v505_v27 = vlaneseq  ;;  %v396_v24 = vld [vmem:[%s2373_s24 + $0x98] sm:$0xff] }
 0x18c   : > { %v2808_v17 = vpop.permute.xlu1 %911  ;;  %v2810_v23 = vpop.permute.xlu0 %920 }
 0x18d   : > { %4662 = vst [vmem:[#allocation61_spill] sm:$0xff] %v2808_v17  ;;  %4663 = vst [vmem:[#allocation62_spill] sm:$0xff] %v2810_v23  ;;  %v398_v23 = vld [vmem:[%s2373_s24 + $0xa8] sm:$0xff] }
 0x18e   : > { %1622 = vperm.xlu1 %2110, %v392_v29   ;;  %1647 = vperm.xlu0 %2109, %v397_v20   ;;  %v2824_v20 = vshrl.u32 %v505_v27, 7 }
 0x190   : > { %v2814_v19 = vpop.permute.xlu1 %917  ;;  %v2816_v16 = vpop.permute.xlu0 %926 }
 0x191   : > { %4664 = vst [vmem:[#allocation63_spill] sm:$0xff] %v2814_v19  ;;  %4665 = vst [vmem:[#allocation64_spill] sm:$0xff] %v2816_v16  ;;  %v403_v19 = vld [vmem:[%s2373_s24 + $0xd0] sm:$0xff] }
 0x192   : > { %1632 = vperm.xlu1 %2110, %v394_v31   ;;  %1657 = vperm.xlu0 %2109, %v399_v25   ;;  %v507_v25 = vsub.s32 1, %v2824_v20 }
 0x194   : > { %v2820_v17 = vpop.permute.xlu1 %923  ;;  %v2822_v29 = vpop.permute.xlu0 %932 }
 0x195   : > { %4666 = vst [vmem:[#allocation65_spill] sm:$0xff] %v2820_v17  ;;  %4667 = vst [vmem:[#allocation66_spill] sm:$0xff] %v2822_v29  ;;  %v735_v17 = vsub.s32 2, %v2824_v20  ;;  %v404_v29 = vld [vmem:[%s2373_s24 + $0xd8] sm:$0xff] }
 0x196   : > { %1642 = vperm.xlu1 %2110, %v396_v24   ;;  %1667 = vperm.xlu0 %2109, %v401_v21   ;;  %v2837_v24 = vld [vmem:[%s2358_s28] sm:$0xf] }
 0x198   : > { %v2828_v16 = vpop.permute.xlu1 %929  ;;  %v2830_v31 = vpop.permute.xlu0 %938 }
 0x199   : > { %4668 = vst [vmem:[#allocation67_spill] sm:$0xff] %v2828_v16  ;;  %4669 = vst [vmem:[#allocation68_spill] sm:$0xff] %v2830_v31  ;;  %v2844_v16 = vrot.slane %v2837_v24, %v507_v25  ;;  %v405_v31 = vld [vmem:[%s2373_s24 + $0xe0] sm:$0xff]  ;;  %v406_v25 = vld [vmem:[%s2373_s24 + $0xe8] sm:$0xff] }
 0x19a   : > { %1652 = vperm.xlu1 %2110, %v398_v23   ;;  %1677 = vperm.xlu0 %2109, %v403_v19   ;;  %v2847_v19 = vrot.slane %v2837_v24, %v735_v17  ;;  %v402_v23 = vld [vmem:[%s2373_s24 + $0xc8] sm:$0xff]  ;;  %v963_v17 = vsub.s32 3, %v2824_v20 }
 0x19c   : > { %v2839_v21 = vpop.permute.xlu1 %935  ;;  %v2841_v27 = vpop.permute.xlu0 %944  ;;  %4672 = vst [vmem:[#allocation71_spill] sm:$0xff] %v2847_v19  ;;  %v2881_v28 = vrot.slane %v2837_v24, %v963_v17 }
 0x19d   : > { %4670 = vst [vmem:[#allocation69_spill] sm:$0xff] %v2839_v21  ;;  %4671 = vst [vmem:[#allocation70_spill] sm:$0xff] %v2841_v27  ;;  %v766_v21 = vsub.s32 %v2748_v22, %v2847_v19 }
 0x19e   : > { %1662 = vperm.xlu1 %2110, %v400_v15   ;;  %1682 = vperm.xlu0 %2109, %v404_v29   ;;  %v511_v15 = vsub.s32 %v2566_v35, %v2844_v16  ;;  %v538_v29 = vsub.s32 %v2650_v0, %v2844_v16  ;;  %v512_v35 = vsub.s32 %v2572_v37, %v2844_v16 }
 0x19f   : > { %v857_v22 = vsub.s32 0, %v766_v21  ;;  %v510_v0 = vsub.s32 %v2574_v38, %v2844_v16  ;;  %v513_v37 = vsub.s32 %v2580_v41, %v2844_v16 }
 0x1a0   : > { %v2851_v18 = vpop.permute.xlu1 %941  ;;  %v2853_v13 = vpop.permute.xlu0 %950  ;;  %v551_v12 = vsub.s32 0, %v512_v35 }
 0x1a1   : > { %4673 = vst [vmem:[#allocation72_spill] sm:$0xff] %v2851_v18  ;;  %4674 = vst [vmem:[#allocation73_spill] sm:$0xff] %v2853_v13  ;;  %v509_v13 = vsub.s32 %v2568_v36, %v2844_v16  ;;  %v540_v36 = vsub.s32 %v2656_v34, %v2844_v16  ;;  %v2886_v38 = vmin.u32 %v857_v22, %v766_v21  ;;  %v545_v9 = vsub.s32 0, %v510_v0 }
 0x1a2   : > { %1672 = vperm.xlu1 %2110, %v402_v23   ;;  %1687 = vperm.xlu0 %2109, %v405_v31   ;;  %v768_v31 = vsub.s32 %v2754_v26, %v2847_v19  ;;  %v514_v23 = vsub.s32 %v2578_v40, %v2844_v16  ;;  %v408_v26 = vld [vmem:[%s2373_s24 + $0xf8] sm:$0xff]  ;;  %v554_v21 = vsub.s32 0, %v513_v37  ;;  %v516_v22 = vsub.s32 %v2584_v42, %v2844_v16 }
 0x1a3   : > { %4677 = vst [vmem:[#allocation76_spill] sm:$0xff] %v2886_v38  ;;  %v635_v41 = vsub.s32 0, %v540_v36 }
 0x1a4   : > { %v2863_v27 = vpop.permute.xlu1 %947  ;;  %v2865_v18 = vpop.permute.xlu0 %956  ;;  %v863_v11 = vsub.s32 0, %v768_v31  ;;  %v557_v10 = vsub.s32 0, %v514_v23 }
 0x1a5   : > { %4675 = vst [vmem:[#allocation74_spill] sm:$0xff] %v2863_v27  ;;  %4676 = vst [vmem:[#allocation75_spill] sm:$0xff] %v2865_v18  ;;  %v548_v18 = vsub.s32 0, %v511_v15  ;;  %v629_v27 = vsub.s32 0, %v538_v29 }
 0x1a6   : > { %1185 = vperm.xlu1 %2110, %v2521_v30   ;;  %1692 = vperm.xlu0 %2109, %v406_v25   ;;  %v542_v25 = vsub.s32 0, %v509_v13  ;;  %v2917_v1 = vmin.u32 %v557_v10, %v514_v23  ;;  %v520_v10 = vsub.s32 %v2596_v46, %v2844_v16  ;;  %v524_v46 = vsub.s32 %v2608_v50, %v2844_v16 }
 0x1a7   : > { %v2892_v34 = vmin.u32 %v548_v18, %v511_v15  ;;  %v2894_v17 = vmin.u32 %v629_v27, %v538_v29  ;;  %v2904_v18 = vmin.u32 %v863_v11, %v768_v31  ;;  %v2922_v11 = vmin.u32 %v635_v41, %v540_v36  ;;  %v407_v31 = vld [vmem:[%s2373_s24 + $0xf0] sm:$0xff] }
 0x1a8   : > { %v954_v14 = vpop.permute.xlu1 %953  ;;  %v2911_v42 = vmin.u32 %v542_v25, %v509_v13  ;;  %v2928_v13 = vmin.u32 %v554_v21, %v513_v37  ;;  %v522_v37 = vsub.s32 %v2602_v48, %v2844_v16  ;;  %v526_v41 = vsub.s32 %v2614_v52, %v2844_v16 }
 0x1a9   : > { %v994_v40 = vsub.s32 %v954_v14, %v2881_v28  ;;  %v2889_v30 = vpop.permute.xlu0 %1098  ;;  %4679 = vst [vmem:[#allocation78_spill] sm:$0xff] %v2894_v17  ;;  %v515_v14 = vsub.s32 %v2586_v43, %v2844_v16  ;;  %4680 = vst [vmem:[#allocation79_spill] sm:$0xff] %v2904_v18  ;;  %v2915_v43 = vmin.u32 %v545_v9, %v510_v0  ;;  %vm1227_vm8 = vcmp.le.s32.totalorder %v2892_v34, 1 }
 0x1aa   : > { %4678 = vst [vmem:[#allocation77_spill] sm:$0xff] %v2889_v30  ;;  %1188 = vperm.xlu1 %2110, %v2532_v33   ;;  %1702 = vperm.xlu0 %2109, %v408_v26   ;;  %v518_v30 = vsub.s32 %v2590_v44, %v2844_v16  ;;  %v1446_v33 = vadd.s32 %v2886_v38, %v2894_v17  ;;  %4682 = vst [vmem:[#allocation81_spill] sm:$0xff] %v2922_v11  ;;  %vm1225_vm0 = vcmp.le.s32.totalorder %v2911_v42, 1 }
 0x1ab   : > { %v1085_v7 = vsub.s32 0, %v994_v40  ;;  %v2913_v26 = vmin.u32 %v551_v12, %v512_v35  ;;  %v517_v44 = vsub.s32 %v2592_v45, %v2844_v16  ;;  %v563_v12 = vsub.s32 0, %v516_v22 }
 0x1ac   : > { %v960_v8 = vpop.permute.xlu1 %959  ;;  %v560_v35 = vsub.s32 0, %v515_v14  ;;  %v569_v9 = vsub.s32 0, %v518_v30  ;;  %v1448_v45 = vadd.s32 %v2904_v18, %v2922_v11  ;;  %v525_v21 = vsub.s32 %v2616_v53, %v2844_v16  ;;  %v4689_v18 = vld [vmem:[#allocation19_spill] sm:$0xff] }
 0x1ad   : > { %v2906_v27 = vmin.u32 %v1085_v7, %v994_v40  ;;  %v996_v15 = vsub.s32 %v960_v8, %v2881_v28  ;;  %v2909_v29 = vpop.permute.xlu0 %1107  ;;  %v521_v40 = vsub.s32 %v2604_v49, %v2844_v16  ;;  %v566_v25 = vsub.s32 0, %v517_v44 }
 0x1ae   : > { %1191 = vperm.xlu1 %2110, %v2529_v32   ;;  %v519_v32 = vsub.s32 %v2598_v47, %v2844_v16  ;;  %v523_v47 = vsub.s32 %v2610_v51, %v2844_v16  ;;  %v2957_v48 = vmin.u32 %v563_v12, %v516_v22  ;;  %v2959_v49 = vmin.u32 %v560_v35, %v515_v14 }
 0x1af   : > { %4681 = vst [vmem:[#allocation80_spill] sm:$0xff] %v2906_v27  ;;  %v1091_v7 = vsub.s32 0, %v996_v15  ;;  %v2926_v8 = vadd.s32 %v2906_v27, %v1446_v33  ;;  %v528_v50 = vsub.s32 %v2620_v54, %v2844_v16  ;;  %v2963_v51 = vmin.u32 %v569_v9, %v518_v30 }
 0x1b0   : > { %v527_v52 = vsub.s32 %v2622_v55, %v2844_v16  ;;  %v530_v53 = vsub.s32 %v2626_v56, %v2844_v16  ;;  %v581_v22 = vsub.s32 0, %v522_v37  ;;  %v578_v14 = vsub.s32 0, %v521_v40 }
 0x1b1   : > { %4683 = vst [vmem:[#allocation82_spill] sm:$0xff] %v2926_v8  ;;  %v2936_v0 = vmin.u32 %v1091_v7, %v996_v15  ;;  %v2938_v23 = vpop.permute.xlu1 %1101  ;;  %v2940_v36 = vpop.permute.xlu0 %1113  ;;  %v575_v15 = vsub.s32 0, %v520_v10  ;;  %v572_v7 = vsub.s32 0, %v519_v32  ;;  %v587_v12 = vsub.s32 0, %v524_v46 }
 0x1b2   : > { %4685 = vst [vmem:[#allocation84_spill] sm:$0xff] %v2940_v36  ;;  %1697 = vperm.xlu1 %2110, %v407_v31   ;;  %v584_v35 = vsub.s32 0, %v523_v47  ;;  %v593_v54 = vsub.s32 0, %v526_v41  ;;  %v590_v30 = vsub.s32 0, %v525_v21  ;;  %v529_v9 = vsub.s32 %v2628_v57, %v2844_v16  ;;  %v4694_v36 = vld [vmem:[#allocation21_spill] sm:$0xff] }
 0x1b3   : > { %4684 = vst [vmem:[#allocation83_spill] sm:$0xff] %v2936_v0  ;;  %v2955_v33 = vadd.s32 %v2936_v0, %v1448_v45  ;;  %v2977_v0 = vmin.u32 %v575_v15, %v520_v10  ;;  %v599_v55 = vsub.s32 0, %v528_v50  ;;  %v532_v56 = vsub.s32 %v2632_v58, %v2844_v16 }
 0x1b4   : > { %v531_v11 = vsub.s32 %v4689_v18, %v2844_v16  ;;  %v2983_v8 = vmin.u32 %v572_v7, %v519_v32  ;;  %v596_v27 = vsub.s32 0, %v527_v52  ;;  %v605_v38 = vsub.s32 0, %v530_v53 }
 0x1b5   : > { %4686 = vst [vmem:[#allocation85_spill] sm:$0xff] %v2955_v33  ;;  %v2969_v31 = vpop.permute.xlu1 %1104  ;;  %v2971_v45 = vpop.permute.xlu0 %1119  ;;  %v2973_v33 = vmin.u32 %v566_v25, %v517_v44  ;;  %v4691_v44 = vld [vmem:[#allocation20_spill] sm:$0xff]  ;;  %v2991_v57 = vmin.u32 %v581_v22, %v522_v37  ;;  %v2993_v10 = vmin.u32 %v578_v14, %v521_v40  ;;  %v2995_v15 = vmin.u32 %v587_v12, %v524_v46  ;;  %v4695_v37 = vld [vmem:[#allocation22_spill] sm:$0xff] }
 0x1b6   : > { %4687 = vst [vmem:[#allocation86_spill] sm:$0xff] %v2969_v31  ;;  %4688 = vst [vmem:[#allocation87_spill] sm:$0xff] %v2971_v45  ;;  %v534_v25 = vsub.s32 %v4691_v44, %v2844_v16  ;;  %v2997_v58 = vmin.u32 %v584_v35, %v523_v47  ;;  %v2999_v18 = vmin.u32 %v593_v54, %v526_v41  ;;  %v602_v7 = vsub.s32 0, %v529_v9  ;;  %v4700_v12 = vld [vmem:[#allocation26_spill] sm:$0xff] }
 0x1b7   : > { %4690 = vst [vmem:[#allocation19_spill] sm:$0xff] %v2983_v8  ;;  %v3001_v32 = vmin.u32 %v590_v30, %v525_v21  ;;  %v533_v44 = vsub.s32 %v4694_v36, %v2844_v16  ;;  %v3005_v31 = vmin.u32 %v599_v55, %v528_v50  ;;  %v536_v40 = vsub.s32 %v4695_v37, %v2844_v16  ;;  %v4699_v36 = vld [vmem:[#allocation23_spill] sm:$0xff] }
 0x1b8   : > { %v3009_v22 = vmin.u32 %v596_v27, %v527_v52  ;;  %v3011_v46 = vmin.u32 %v605_v38, %v530_v53  ;;  %v617_v47 = vsub.s32 0, %v534_v25  ;;  %v737_v41 = vsub.s32 %v2664_v62, %v2847_v19  ;;  %v4701_v38 = vld [vmem:[#allocation27_spill] sm:$0xff]  ;;  %v4702_v62 = vld [vmem:[#allocation24_spill] sm:$0xff] }
 0x1b9   : > { %v2987_v17 = vpop.permute.xlu1 %1110  ;;  %v2989_v45 = vpop.permute.xlu0 %1125  ;;  %v535_v50 = vsub.s32 %v4699_v36, %v2844_v16  ;;  %v738_v35 = vsub.s32 %v4700_v12, %v2847_v19  ;;  %v739_v27 = vsub.s32 %v2668_v3, %v2847_v19  ;;  %v740_v52 = vsub.s32 %v4701_v38, %v2847_v19 }
 0x1ba   : > { %4692 = vst [vmem:[#allocation20_spill] sm:$0xff] %v2987_v17  ;;  %4693 = vst [vmem:[#allocation88_spill] sm:$0xff] %v2989_v45  ;;  %v611_v17 = vsub.s32 0, %v532_v56  ;;  %v608_v45 = vsub.s32 0, %v531_v11  ;;  %v3027_v53 = vmin.u32 %v602_v7, %v529_v9  ;;  %v614_v54 = vsub.s32 0, %v533_v44 }
 0x1bb   : > { %4696 = vst [vmem:[#allocation21_spill] sm:$0xff] %v3011_v46  ;;  %v537_v30 = vsub.s32 %v4702_v62, %v2844_v16  ;;  %v741_v55 = vsub.s32 %v2674_v39, %v2847_v19  ;;  %v623_v12 = vsub.s32 0, %v536_v40  ;;  %v742_v3 = vsub.s32 %v2676_v59, %v2847_v19 }
 0x1bc   : > { %v3033_v37 = vmin.u32 %v611_v17, %v532_v56  ;;  %v3035_v36 = vmin.u32 %v608_v45, %v531_v11  ;;  %v770_v38 = vsub.s32 0, %v737_v41  ;;  %v743_v9 = vsub.s32 %v2680_v63, %v2847_v19 }
 0x1bd   : > { %v3015_v21 = vpop.permute.xlu1 %1116  ;;  %v3017_v14 = vpop.permute.xlu0 %1131  ;;  %v744_v7 = vsub.s32 %v2682_v2, %v2847_v19  ;;  %v620_v17 = vsub.s32 0, %v535_v50  ;;  %v773_v11 = vsub.s32 0, %v738_v35  ;;  %v776_v45 = vsub.s32 0, %v739_v27 }
 0x1be   : > { %4697 = vst [vmem:[#allocation22_spill] sm:$0xff] %v3015_v21  ;;  %4698 = vst [vmem:[#allocation89_spill] sm:$0xff] %v3017_v14  ;;  %v3039_v14 = vmin.u32 %v617_v47, %v534_v25  ;;  %v779_v56 = vsub.s32 0, %v740_v52  ;;  %v3049_v21 = vmin.u32 %v614_v54, %v533_v44  ;;  %v626_v59 = vsub.s32 0, %v537_v30 }
 0x1bf   : > { %4703 = vst [vmem:[#allocation23_spill] sm:$0xff] %v3033_v37  ;;  %4704 = vst [vmem:[#allocation26_spill] sm:$0xff] %v3035_v36  ;;  %v782_v25 = vsub.s32 0, %v741_v55  ;;  %v745_v47 = vsub.s32 %v2686_v60, %v2847_v19  ;;  %v785_v63 = vsub.s32 0, %v742_v3  ;;  %v746_v2 = vsub.s32 %v2688_v4, %v2847_v19 }
 0x1c0   : > { %4705 = vst [vmem:[#allocation27_spill] sm:$0xff] %v3039_v14  ;;  %4708 = vst [vmem:[#allocation91_spill] sm:$0xff] %v3049_v21  ;;  %v3053_v14 = vmin.u32 %v623_v12, %v536_v40  ;;  %v788_v37 = vsub.s32 0, %v743_v9  ;;  %v791_v36 = vsub.s32 0, %v744_v7  ;;  %v747_v44 = vsub.s32 %v2692_v61, %v2847_v19 }
 0x1c1   : > { %v3045_v62 = vpop.permute.xlu1 %1122  ;;  %v3047_v39 = vpop.permute.xlu0 %1137  ;;  %v3066_v60 = vmin.u32 %v620_v17, %v535_v50  ;;  %v3068_v40 = vmin.u32 %v773_v11, %v738_v35  ;;  %v3070_v12 = vmin.u32 %v776_v45, %v739_v27  ;;  %v3072_v4 = vmin.u32 %v779_v56, %v740_v52 }
 0x1c2   : > { %4706 = vst [vmem:[#allocation24_spill] sm:$0xff] %v3045_v62  ;;  %4707 = vst [vmem:[#allocation90_spill] sm:$0xff] %v3047_v39  ;;  %v1095_v62 = vsub.s32 0, %v2824_v20  ;;  %v3058_v39 = vmin.u32 %v770_v38, %v737_v41  ;;  %v3074_v20 = vmin.u32 %v626_v59, %v537_v30  ;;  %v4714_v41 = vld [vmem:[#allocation25_spill] sm:$0xff]  ;;  %v794_v61 = vsub.s32 0, %v745_v47  ;;  %v4729_v59 = vld [vmem:[#allocation30_spill] sm:$0xff] }
 0x1c3   : > { %4709 = vst [vmem:[#allocation92_spill] sm:$0xff] %v3053_v14  ;;  %4712 = vst [vmem:[#allocation95_spill] sm:$0xff] %v3066_v60  ;;  %v3078_v38 = vsub.s32 %v4714_v41, %v2844_v16  ;;  %v3080_v14 = vmin.u32 %v782_v25, %v741_v55  ;;  %v748_v50 = vsub.s32 %v2694_v5, %v2847_v19  ;;  %v800_v30 = vsub.s32 0, %v747_v44  ;;  %v4732_v41 = vld [vmem:[#allocation31_spill] sm:$0xff] }
 0x1c4   : > { %4713 = vst [vmem:[#allocation96_spill] sm:$0xff] %v3074_v20  ;;  %v3087_v35 = vrot.slane %v2837_v24, %v1095_v62  ;;  %v3089_v27 = vmin.u32 %v788_v37, %v743_v9  ;;  %v3091_v52 = vmin.u32 %v791_v36, %v744_v7  ;;  %v3099_v55 = vadd.s32 %v3058_v39, %v2911_v42  ;;  %v4725_v9 = vld [vmem:[#allocation28_spill] sm:$0xff]  ;;  %v4726_v62 = vld [vmem:[#allocation29_spill] sm:$0xff]  ;;  %v4786_v42 = vld [vmem:[#allocation86_spill] sm:$0xff] }
 0x1c5   : > { %v3062_v54 = vpop.permute.xlu1 %1128  ;;  %v3064_v21 = vpop.permute.xlu0 %1143  ;;  %4715 = vst [vmem:[#allocation25_spill] sm:$0xff] %v3078_v38  ;;  %v3105_v5 = vadd.s32 %v3070_v12, %v2892_v34  ;;  %v3109_v24 = vadd.s32 %v3068_v40, %v2915_v43  ;;  %v3113_v37 = vadd.s32 %v3072_v4, %v2913_v26  ;;  %v3115_v36 = vmin.u32 %v794_v61, %v745_v47  ;;  %v4737_v38 = vld [vmem:[#allocation32_spill] sm:$0xff] }
 0x1c6   : > { %4710 = vst [vmem:[#allocation93_spill] sm:$0xff] %v3062_v54  ;;  %4711 = vst [vmem:[#allocation94_spill] sm:$0xff] %v3064_v21  ;;  %v3082_v54 = vmin.u32 %v785_v63, %v742_v3  ;;  %v797_v21 = vsub.s32 0, %v746_v2  ;;  %v749_v3 = vsub.s32 %v2698_v6, %v2847_v19  ;;  %v750_v7 = vsub.s32 %v4725_v9, %v2847_v19 }
 0x1c7   : > { %4716 = vst [vmem:[#allocation97_spill] sm:$0xff] %v3089_v27  ;;  %4717 = vst [vmem:[#allocation98_spill] sm:$0xff] %v3091_v52  ;;  %v751_v6 = vsub.s32 %v4726_v62, %v2847_v19  ;;  %v3123_v11 = vadd.s32 %v3080_v14, %v2928_v13  ;;  %v803_v56 = vsub.s32 0, %v748_v50  ;;  %v752_v25 = vsub.s32 %v4729_v59, %v2847_v19 }
 0x1c8   : > { %4720 = vst [vmem:[#allocation101_spill] sm:$0xff] %v3099_v55  ;;  %4721 = vst [vmem:[#allocation102_spill] sm:$0xff] %v3105_v5  ;;  %v3125_v45 = vmin.u32 %v797_v21, %v746_v2  ;;  %v3131_v47 = vadd.s32 %v3082_v54, %v2917_v1  ;;  %v3133_v63 = vmin.u32 %v800_v30, %v747_v44  ;;  %v806_v59 = vsub.s32 0, %v749_v3  ;;  %v4738_v30 = vld [vmem:[#allocation33_spill] sm:$0xff] }
 0x1c9   : > { %v3093_v17 = vpop.permute.xlu1 %1134  ;;  %v3095_v16 = vpop.permute.xlu0 %1149  ;;  %4722 = vst [vmem:[#allocation103_spill] sm:$0xff] %v3109_v24  ;;  %4723 = vst [vmem:[#allocation104_spill] sm:$0xff] %v3113_v37  ;;  %v753_v61 = vsub.s32 %v4732_v41, %v2847_v19  ;;  %v3143_v21 = vadd.s32 %v3089_v27, %v2959_v49  ;;  %v3147_v2 = vadd.s32 %v3091_v52, %v2957_v48  ;;  %v4739_v41 = vld [vmem:[#allocation34_spill] sm:$0xff]  ;;  %vm1228_vm1 = vcmp.le.s32.totalorder %v2913_v26, 1  ;;  %v4745_v24 = vld [vmem:[#allocation49_spill] sm:$0xff] }
 0x1ca   : > { %4718 = vst [vmem:[#allocation99_spill] sm:$0xff] %v3093_v17  ;;  %4719 = vst [vmem:[#allocation100_spill] sm:$0xff] %v3095_v16  ;;  %v754_v44 = vsub.s32 %v4737_v38, %v2847_v19  ;;  %v755_v20 = vsub.s32 %v4738_v30, %v2847_v19  ;;  %v756_v60 = vsub.s32 %v4739_v41, %v2847_v19  ;;  %v812_v16 = vsub.s32 0, %v751_v6  ;;  %v4742_v30 = vld [vmem:[#allocation45_spill] sm:$0xff]  ;;  %v4744_v17 = vld [vmem:[#allocation36_spill] sm:$0xff] }
 0x1cb   : > { %4724 = vst [vmem:[#allocation105_spill] sm:$0xff] %v3115_v36  ;;  %4727 = vst [vmem:[#allocation28_spill] sm:$0xff] %v3123_v11  ;;  %v3163_v38 = vmin.u32 %v803_v56, %v748_v50  ;;  %v965_v11 = vsub.s32 %v4742_v30, %v2881_v28  ;;  %v3169_v41 = vadd.s32 %v3125_v45, %v2963_v51  ;;  %v818_v5 = vsub.s32 0, %v753_v61  ;;  %v4768_v26 = vld [vmem:[#allocation39_spill] sm:$0xff] }
 0x1cc   : > { %4728 = vst [vmem:[#allocation29_spill] sm:$0xff] %v3125_v45  ;;  %4730 = vst [vmem:[#allocation30_spill] sm:$0xff] %v3131_v47  ;;  %v4740_v47 = vld [vmem:[#allocation35_spill] sm:$0xff]  ;;  %v968_v37 = vsub.s32 %v4745_v24, %v2881_v28  ;;  %vm1289_vm2 = vcmp.le.s32.totalorder %v3058_v39, 1  ;;  %v3182_v56 = vadd.s32 %v3133_v63, %v2983_v8  ;;  %v3184_v30 = vmin.u32 %v806_v59, %v749_v3  ;;  %v4751_v59 = vld [vmem:[#allocation77_spill] sm:$0xff] }
 0x1cd   : > { %4731 = vst [vmem:[#allocation106_spill] sm:$0xff] %v3133_v63  ;;  %v3137_v9 = vpop.permute.xlu1 %1140  ;;  %v3139_v62 = vpop.permute.xlu0 %1155  ;;  %4735 = vst [vmem:[#allocation108_spill] sm:$0xff] %v3143_v21  ;;  %v757_v21 = vsub.s32 %v4740_v47, %v2847_v19  ;;  %v758_v47 = vsub.s32 %v4744_v17, %v2847_v19  ;;  %v824_v45 = vsub.s32 0, %v755_v20  ;;  %v827_v52 = vsub.s32 0, %v756_v60  ;;  %v4750_v63 = vld [vmem:[#allocation38_spill] sm:$0xff] }
 0x1ce   : > { %4733 = vst [vmem:[#allocation31_spill] sm:$0xff] %v3137_v9  ;;  %4734 = vst [vmem:[#allocation107_spill] sm:$0xff] %v3139_v62  ;;  %v809_v62 = vsub.s32 0, %v750_v7  ;;  %v815_v9 = vsub.s32 0, %v752_v25  ;;  %vm1292_vm3 = vcmp.le.s32.totalorder %v3072_v4, 1  ;;  %v3189_v24 = vmin.u32 %v812_v16, %v751_v6 }
 0x1cf   : > { %4736 = vst [vmem:[#allocation109_spill] sm:$0xff] %v3147_v2  ;;  %v3161_v2 = vadd.s32 %v3115_v36, %v2973_v33  ;;  %4743 = vst [vmem:[#allocation33_spill] sm:$0xff] %v3169_v41  ;;  %v821_v41 = vsub.s32 0, %v754_v44  ;;  %v830_v36 = vsub.s32 0, %v757_v21  ;;  %v998_v3 = vsub.s32 0, %v965_v11 }
 0x1d0   : > { %4748 = vst [vmem:[#allocation45_spill] sm:$0xff] %v3182_v56  ;;  %v3187_v17 = vmin.u32 %v809_v62, %v750_v7  ;;  %v760_v56 = vsub.s32 %v4750_v63, %v2847_v19  ;;  %vm1193_vm4 = vcmp.eq.s32.totalorder %v3087_v35, %v4751_v59  ;;  %v3199_v8 = vmin.u32 %v818_v5, %v753_v61 }
 0x1d1   : > { %4741 = vst [vmem:[#allocation32_spill] sm:$0xff] %v3161_v2  ;;  %v3176_v2 = vpop.permute.xlu1 %1146  ;;  %v3178_v50 = vpop.permute.xlu0 %1161  ;;  %v833_v27 = vsub.s32 0, %v758_v47  ;;  %v1007_v7 = vsub.s32 0, %v968_v37  ;;  %vm1196_vm5 = vcmp.eq.s32.totalorder %v3087_v35, %v2909_v29  ;;  %v3211_v63 = vmin.u32 %v827_v52, %v756_v60  ;;  %vm3222_vm7 = vmand %vm1193_vm4, %vm1225_vm0 }
 0x1d2   : > { %4746 = vst [vmem:[#allocation34_spill] sm:$0xff] %v3176_v2  ;;  %4747 = vst [vmem:[#allocation35_spill] sm:$0xff] %v3178_v50  ;;  %v4749_v2 = vld [vmem:[#allocation37_spill] sm:$0xff]  ;;  %v3193_v50 = vmin.u32 %v815_v9, %v752_v25  ;;  %v3207_v25 = vmin.u32 %v821_v41, %v754_v44  ;;  %v3209_v9 = vmin.u32 %v824_v45, %v755_v20  ;;  %vm1226_vm6 = vcmp.le.s32.totalorder %v2915_v43, 1 }
 0x1d3   : > { %v759_v55 = vsub.s32 %v4749_v2, %v2847_v19  ;;  %4756 = vst [vmem:[#allocation77_spill] sm:$0xff] %v3211_v63  ;;  %v3216_v5 = vadd.s32 %v3163_v38, %v2977_v0  ;;  %v3218_v61 = vmin.u32 %v830_v36, %v757_v21  ;;  %v3229_v60 = vadd.s32 %v3184_v30, %v2993_v10  ;;  %vm3240_vm9 = vmand %vm1196_vm5, %vm1228_vm1  ;;  %v4779_v2 = vld [vmem:[#allocation46_spill] sm:$0xff] }
 0x1d4   : > { %4754 = vst [vmem:[#allocation37_spill] sm:$0xff] %v3207_v25  ;;  %4755 = vst [vmem:[#allocation38_spill] sm:$0xff] %v3209_v9  ;;  %v3233_v20 = vadd.s32 %v3187_v17, %v2991_v57  ;;  %v839_v52 = vsub.s32 0, %v760_v56  ;;  %v1989_v36 = vmin.u32 %v998_v3, %v965_v11  ;;  %vm1230_vm10 = vcmp.le.s32.totalorder %v2917_v1, 1 }
 0x1d5   : > { %v3203_v16 = vpop.permute.xlu1 %1152  ;;  %v3205_v6 = vpop.permute.xlu0 %1167  ;;  %4757 = vst [vmem:[#allocation110_spill] sm:$0xff] %v3216_v5  ;;  %4758 = vst [vmem:[#allocation111_spill] sm:$0xff] %v3218_v61  ;;  %v836_v62 = vsub.s32 0, %v759_v55  ;;  %v3247_v45 = vadd.s32 %v3189_v24, %v2997_v58  ;;  %v3251_v21 = vadd.s32 %v3193_v50, %v2995_v15  ;;  %v3253_v11 = vmin.u32 %v833_v27, %v758_v47  ;;  %v4772_v27 = vld [vmem:[#allocation40_spill] sm:$0xff]  ;;  %v4797_v5 = vld [vmem:[#allocation50_spill] sm:$0xff] }
 0x1d6   : > { %4752 = vst [vmem:[#allocation36_spill] sm:$0xff] %v3203_v16  ;;  %4753 = vst [vmem:[#allocation49_spill] sm:$0xff] %v3205_v6  ;;  %v761_v44 = vsub.s32 %v4768_v26, %v2847_v19  ;;  %v3257_v29 = vmin.u32 %v1007_v7, %v968_v37  ;;  %vm1290_vm11 = vcmp.le.s32.totalorder %v3068_v40, 1  ;;  %vm1229_vm12 = vcmp.le.s32.totalorder %v2928_v13, 1 }
 0x1d7   : > { %4761 = vst [vmem:[#allocation112_spill] sm:$0xff] %v3229_v60  ;;  %4762 = vst [vmem:[#allocation113_spill] sm:$0xff] %v3233_v20  ;;  %v3267_v59 = vadd.s32 %v3199_v8, %v3001_v32  ;;  %v762_v47 = vsub.s32 %v4772_v27, %v2847_v19  ;;  %vm1291_vm14 = vcmp.le.s32.totalorder %v3070_v12, 1  ;;  %v3282_v7 = vadd.s32 %v3209_v9, %v3009_v22  ;;  %v4807_v60 = vld [vmem:[#allocation23_spill] sm:$0xff] }
 0x1d8   : > { %4765 = vst [vmem:[#allocation114_spill] sm:$0xff] %v3247_v45  ;;  %4766 = vst [vmem:[#allocation115_spill] sm:$0xff] %v3251_v21  ;;  %v3286_v26 = vadd.s32 %v3207_v25, %v2999_v18  ;;  %v3290_v27 = vadd.s32 %v3211_v63, %v3005_v31  ;;  %v3292_v39 = vmin.u32 %v836_v62, %v759_v55  ;;  %v842_v4 = vsub.s32 0, %v761_v44  ;;  %v4793_v45 = vld [vmem:[#allocation42_spill] sm:$0xff] }
 0x1d9   : > { %4767 = vst [vmem:[#allocation116_spill] sm:$0xff] %v3253_v11  ;;  %v3261_v41 = vpop.permute.xlu1 %1158  ;;  %v3263_v3 = vpop.permute.xlu0 %1173  ;;  %4771 = vst [vmem:[#allocation118_spill] sm:$0xff] %v3267_v59  ;;  %v966_v21 = vsub.s32 %v4779_v2, %v2881_v28  ;;  %v4780_v59 = vld [vmem:[#allocation47_spill] sm:$0xff]  ;;  %v3309_v55 = vadd.s32 %v3218_v61, %v3027_v53  ;;  %v3311_v62 = vmin.u32 %v839_v52, %v760_v56  ;;  %v4785_v2 = vld [vmem:[#allocation48_spill] sm:$0xff] }
 0x1da   : > { %4769 = vst [vmem:[#allocation39_spill] sm:$0xff] %v3261_v41  ;;  %4770 = vst [vmem:[#allocation117_spill] sm:$0xff] %v3263_v3  ;;  %v967_v3 = vsub.s32 %v4780_v59, %v2881_v28  ;;  %vm1194_vm1 = vcmp.eq.s32.totalorder %v3087_v35, %v2938_v23  ;;  %vm1195_vm4 = vcmp.eq.s32.totalorder %v3087_v35, %v4786_v42  ;;  %v4803_v23 = vld [vmem:[#allocation97_spill] sm:$0xff]  ;;  %v4805_v61 = vld [vmem:[#allocation26_spill] sm:$0xff] }
 0x1db   : > { %vm3275_vm13 = vmand %vm3222_vm7, %vm1289_vm2  ;;  %4775 = vst [vmem:[#allocation40_spill] sm:$0xff] %v3282_v7  ;;  %v3334_v52 = vadd.s32 %v3253_v11, %v3011_v46  ;;  %v764_v6 = vsub.s32 %v4793_v45, %v2847_v19  ;;  %v1001_v11 = vsub.s32 0, %v966_v21  ;;  %v4800_v7 = vld [vmem:[#allocation20_spill] sm:$0xff]  ;;  %v3378_v9 = vadd.s32 %v3292_v39, %v4805_v61  ;;  %v4810_v42 = vld [vmem:[#allocation51_spill] sm:$0xff] }
 0x1dc   : > { %4776 = vst [vmem:[#allocation119_spill] sm:$0xff] %v3286_v26  ;;  %4777 = vst [vmem:[#allocation120_spill] sm:$0xff] %v3290_v27  ;;  %v969_v27 = vsub.s32 %v4785_v2, %v2881_v28  ;;  %v845_v2 = vsub.s32 0, %v762_v47  ;;  %v4792_v26 = vld [vmem:[#allocation41_spill] sm:$0xff]  ;;  %v3382_v34 = vadd.s32 %v3311_v62, %v4807_v60  ;;  %v3384_v25 = vmin.u32 %v842_v4, %v761_v44  ;;  %v4811_v46 = vld [vmem:[#allocation52_spill] sm:$0xff] }
 0x1dd   : > { %4778 = vst [vmem:[#allocation121_spill] sm:$0xff] %v3292_v39  ;;  %vm3302_vm15 = vmand %vm3240_vm9, %vm1292_vm3  ;;  %vm1353_vm3 = vcmp.le.s32.totalorder %v1989_v36, 1  ;;  %v3321_v59 = vpop.permute.xlu1 %1164  ;;  %vm1356_vm9 = vcmp.le.s32.totalorder %v3257_v29, 1  ;;  %v763_v20 = vsub.s32 %v4792_v26, %v2847_v19  ;;  %v970_v41 = vsub.s32 %v4810_v42, %v2881_v28  ;;  %v4815_v44 = vld [vmem:[#allocation19_spill] sm:$0xff]  ;;  %v4851_v56 = vld [vmem:[#allocation29_spill] sm:$0xff] }
 0x1de   : > { %4783 = vst [vmem:[#allocation46_spill] sm:$0xff] %v3309_v55  ;;  %4784 = vst [vmem:[#allocation47_spill] sm:$0xff] %v3311_v62  ;;  %v3323_v55 = vpop.permute.xlu0 %1179  ;;  %v1010_v26 = vsub.s32 0, %v969_v27  ;;  %v973_v16 = vsub.s32 %v4811_v46, %v2881_v28  ;;  %v851_v1 = vsub.s32 0, %v764_v6  ;;  %v3429_v40 = vmin.u32 %v1001_v11, %v966_v21  ;;  %v4830_v21 = vld [vmem:[#allocation88_spill] sm:$0xff]  ;;  %v4852_v39 = vld [vmem:[#allocation93_spill] sm:$0xff] }
 0x1df   : > { %4787 = vst [vmem:[#allocation48_spill] sm:$0xff] %v3321_v59  ;;  %4788 = vst [vmem:[#allocation86_spill] sm:$0xff] %v3323_v55  ;;  %v4794_v55 = vld [vmem:[#allocation84_spill] sm:$0xff]  ;;  %v971_v59 = vsub.s32 %v4797_v5, %v2881_v28  ;;  %v4804_v5 = vld [vmem:[#allocation101_spill] sm:$0xff]  ;;  %v848_v46 = vsub.s32 0, %v763_v20 }
 0x1e0   : > { %vm3327_vm7 = vmand %vm3275_vm13, %vm1353_vm3  ;;  %4791 = vst [vmem:[#allocation122_spill] sm:$0xff] %v3334_v52  ;;  %vm1198_vm5 = vcmp.eq.s32.totalorder %v3087_v35, %v4794_v55  ;;  %v1004_v52 = vsub.s32 0, %v967_v3  ;;  %vm1294_vm13 = vcmp.le.s32.totalorder %v3082_v54, 1  ;;  %v1449_v63 = vadd.s32 %v1989_v36, %v4804_v5  ;;  %v4814_v5 = vld [vmem:[#allocation87_spill] sm:$0xff]  ;;  %v4831_v11 = vld [vmem:[#allocation104_spill] sm:$0xff] }
 0x1e1   : > { %vm3345_vm3 = vmand %vm3302_vm15, %vm1356_vm9  ;;  %vm1197_vm15 = vcmp.eq.s32.totalorder %v3087_v35, %v4800_v7  ;;  %4806 = vst [vmem:[#allocation41_spill] sm:$0xff] %v3378_v9  ;;  %v3402_v4 = vpop.permute.xlu1 %1170  ;;  %v4817_v9 = vld [vmem:[#allocation43_spill] sm:$0xff]  ;;  %v1016_v45 = vsub.s32 0, %v971_v59  ;;  %v4825_v7 = vld [vmem:[#allocation98_spill] sm:$0xff]  ;;  %vm4839_vm9 = vcmp.le.s32.totalorder %v2959_v49, 1  ;;  %v3500_v49 = vmin.u32 %v851_v1, %v764_v6 }
 0x1e2   : > { %vm3356_vm2 = vmand %vm1194_vm1, %vm1226_vm6  ;;  %4808 = vst [vmem:[#allocation42_spill] sm:$0xff] %v3382_v34  ;;  %v3404_v42 = vpop.permute.xlu0 %1547  ;;  %v3406_v34 = vmin.u32 %v845_v2, %v762_v47  ;;  %v765_v55 = vsub.s32 %v4817_v9, %v2847_v19  ;;  %v4822_v2 = vld [vmem:[#allocation105_spill] sm:$0xff]  ;;  %v3431_v9 = vmin.u32 %v1004_v52, %v967_v3  ;;  %v4826_v19 = vld [vmem:[#allocation22_spill] sm:$0xff]  ;;  %v1452_v3 = vadd.s32 %v3257_v29, %v4831_v11 }
 0x1e3   : > { %vm3369_vm0 = vmand %vm1195_vm4, %vm1227_vm8  ;;  %4809 = vst [vmem:[#allocation84_spill] sm:$0xff] %v3384_v25  ;;  %vm1200_vm4 = vcmp.eq.s32.totalorder %v3087_v35, %v4814_v5  ;;  %v1022_v52 = vsub.s32 0, %v973_v16  ;;  %vm4833_vm1 = vcmp.le.s32.totalorder %v3080_v14, 1  ;;  %v4836_v5 = vld [vmem:[#allocation24_spill] sm:$0xff]  ;;  %v3477_v11 = vmin.u32 %v848_v46, %v763_v20  ;;  %v4842_v47 = vld [vmem:[#allocation89_spill] sm:$0xff] }
 0x1e4   : > { %vm3395_vm8 = vmand %vm1198_vm5, %vm1230_vm10  ;;  %4816 = vst [vmem:[#allocation50_spill] sm:$0xff] %v3406_v34  ;;  %v3444_v34 = vmin.u32 %v1010_v26, %v969_v27  ;;  %v1013_v27 = vsub.s32 0, %v970_v41  ;;  %v4845_v20 = vld [vmem:[#allocation91_spill] sm:$0xff]  ;;  %v4862_v36 = vld [vmem:[#allocation102_spill] sm:$0xff] }
 0x1e5   : > { %vm3414_vm10 = vmand %vm3356_vm2, %vm1290_vm11  ;;  %vm1199_vm2 = vcmp.eq.s32.totalorder %v3087_v35, %v4826_v19  ;;  %4838 = vst [vmem:[#allocation97_spill] sm:$0xff] %v3477_v11  ;;  %v3498_v46 = vadd.s32 %v3384_v25, %v4845_v20  ;;  %v3502_v19 = vmin.u32 %v1016_v45, %v971_v59  ;;  %v4849_v11 = vmov 0  ;;  %v4853_v25 = vld [vmem:[#allocation103_spill] sm:$0xff]  ;;  %v4854_v59 = vld [vmem:[#allocation53_spill] sm:$0xff] }
 0x1e6   : > { %vm3423_vm5 = vmand %vm1197_vm15, %vm1229_vm12  ;;  %vm4827_vm15 = vcmp.le.s32.totalorder %v2957_v48, 1  ;;  %vm1481_vm12 = vcmp.ge.s32.totalorder %v1449_v63, 1  ;;  %v4832_v48 = vld [vmem:[#allocation54_spill] sm:$0xff]  ;;  %v3473_v63 = vpop.permute.xlu1 %1176  ;;  %v3475_v29 = vpop.permute.xlu0 %1557  ;;  %4847 = vst [vmem:[#allocation26_spill] sm:$0xff] %v3500_v49  ;;  %v1450_v6 = vadd.s32 %v3429_v40, %v4853_v25  ;;  %v972_v1 = vsub.s32 %v4854_v59, %v2881_v28  ;;  %v4861_v54 = vld [vmem:[#allocation99_spill] sm:$0xff] }
 0x1e7   : > { %vm3437_vm11 = vmand %vm3369_vm0, %vm1291_vm14  ;;  %vm1202_vm14 = vcmp.eq.s32.totalorder %v3087_v35, %v4830_v21  ;;  %v975_v26 = vsub.s32 %v4832_v48, %v2881_v28  ;;  %4837 = vst [vmem:[#allocation20_spill] sm:$0xff] %v3473_v63  ;;  %v854_v48 = vsub.s32 0, %v765_v55  ;;  %v4860_v25 = vld [vmem:[#allocation106_spill] sm:$0xff]  ;;  %v1451_v21 = vadd.s32 %v3431_v9, %v4862_v36  ;;  %v4874_v14 = vld [vmem:[#allocation55_spill] sm:$0xff] }
 0x1e8   : > { %vm3451_vm6 = vmand %vm1200_vm4, %vm4827_vm15  ;;  %vm1201_vm15 = vcmp.eq.s32.totalorder %v3087_v35, %v4836_v5  ;;  %4846 = vst [vmem:[#allocation101_spill] sm:$0xff] %v3498_v46  ;;  %v3546_v5 = vmin.u32 %v1022_v52, %v973_v16  ;;  %v4864_v46 = vmov 0  ;;  %v4875_v36 = vld [vmem:[#allocation90_spill] sm:$0xff]  ;;  %v4922_v63 = vmov 0  ;;  %v4945_v52 = vld [vmem:[#allocation59_spill] sm:$0xff] }
 0x1e9   : > { %vm3466_vm4 = vmand %vm3423_vm5, %vm4833_vm1  ;;  %v1028_v59 = vsub.s32 0, %v975_v26 }
 0x1ea   : > { %vm3484_vm1 = vmand %vm1199_vm2, %vm4839_vm9  ;;  %vm4848_vm9 = vcmp.le.s32.totalorder %v2963_v51, 1  ;;  %v4855_v51 = vmov 0  ;;  %v3565_v16 = vpop.permute.xlu1 %1182 }
 0x1eb   : > { %vm3492_vm0 = vmand %vm3327_vm7, %vm1481_vm12  ;;  %vm4866_vm12 = vcmp.le.s32.totalorder %v2977_v0, 1  ;;  %v3579_v0 = vmin.u32 %v854_v48, %v765_v55  ;;  %v4880_v55 = vld [vmem:[#allocation56_spill] sm:$0xff] }
 0x1ec   : > { %vm3509_vm2 = vmand %vm1202_vm14, %vm4848_vm9  ;;  %vm4857_vm14 = vcmp.le.s32.totalorder %v2973_v33, 1  ;;  %v3544_v33 = vmin.u32 %v1013_v27, %v970_v41  ;;  %v3567_v41 = vpop.permute.xlu0 %1567  ;;  %v977_v48 = vsub.s32 %v4880_v55, %v2881_v28  ;;  %v4902_v55 = vld [vmem:[#allocation94_spill] sm:$0xff] }
 0x1ed   : > { %v4850_v11 = vsel %vm3509_vm2, 4294967295, %v4849_v11  ;;  %vm3524_vm5 = vmand %vm3395_vm8, %vm1294_vm13  ;;  %vm1484_vm8 = vcmp.ge.s32.totalorder %v1452_v3, 1  ;;  %vm4867_vm13 = vcmp.eq.s32.totalorder %v3087_v35, %v4842_v47  ;;  %v4868_v3 = vmov 0  ;;  %4873 = vst [vmem:[#allocation23_spill] sm:$0xff] %v3579_v0  ;;  %v4942_v0 = vld [vmem:[#allocation36_spill] sm:$0xff] }
 0x1ee   : > { %v4856_v51 = vsel %vm3524_vm5, 4294967295, %v4855_v51  ;;  %vm3533_vm9 = vmand %vm1201_vm15, %vm4857_vm14  ;;  %vm4863_vm15 = vcmp.le.s32.totalorder %v4803_v23, 1  ;;  %v4870_v23 = vld [vmem:[#allocation28_spill] sm:$0xff]  ;;  %v3583_v47 = vsub.s32 %v4874_v14, %v2881_v28  ;;  %v1019_v14 = vsub.s32 0, %v972_v1  ;;  %v1553_v13 = vpop.permute.xlu1 %1552 }
 0x1ef   : > { %vm3552_vm14 = vmand %vm3484_vm1, %vm4863_vm15  ;;  %v3571_v27 = vadd.s32 %v3444_v34, %v4870_v23  ;;  %vm4877_vm15 = vcmp.eq.s32.totalorder %v3087_v35, %v4852_v39  ;;  %v4886_v39 = vmov 0  ;;  %v4888_v23 = vld [vmem:[#allocation31_spill] sm:$0xff]  ;;  %vm1482_vm5 = vcmp.ge.s32.totalorder %v1450_v6, 1  ;;  %v4901_v6 = vld [vmem:[#allocation30_spill] sm:$0xff] }
 0x1f0   : > { %v4865_v46 = vsel %vm3552_vm14, 4294967295, %v4864_v46  ;;  %vm3561_vm7 = vmand %vm4867_vm13, %vm4866_vm12  ;;  %vm4876_vm13 = vcmp.le.s32.totalorder %v4815_v44, 1  ;;  %vm4881_vm12 = vcmp.le.s32.totalorder %v4822_v2, 1  ;;  %v4882_v44 = vmov 0  ;;  %v4889_v2 = vld [vmem:[#allocation108_spill] sm:$0xff]  ;;  %v3658_v12 = vpop.permute.xlu0 %1577 }
 0x1f1   : > { %v4869_v3 = vsel %vm3561_vm7, 4294967295, %v4868_v3  ;;  %vm3575_vm1 = vmand %vm3345_vm3, %vm1484_vm8  ;;  %vm1355_vm8 = vcmp.le.s32.totalorder %v3431_v9, 1  ;;  %v3623_v45 = vadd.s32 %v3502_v19, %v4889_v2  ;;  %v3641_v9 = vmin.u32 %v1028_v59, %v975_v26 }
 0x1f2   : > { %vm3592_vm2 = vmand %vm4877_vm15, %vm4876_vm13  ;;  %vm4884_vm13 = vcmp.le.s32.totalorder %v2993_v10, 1  ;;  %vm4885_vm15 = vcmp.eq.s32.totalorder %v3087_v35, %v4861_v54  ;;  %v1454_v59 = vadd.s32 %v3544_v33, %v4901_v6  ;;  %v4910_v6 = vld [vmem:[#allocation57_spill] sm:$0xff]  ;;  %v5090_v10 = vld [vmem:[#allocation115_spill] sm:$0xff] }
 0x1f3   : > { %vm3605_vm7 = vmand %vm3533_vm9, %vm4881_vm12  ;;  %vm4890_vm9 = vcmp.le.s32.totalorder %v4825_v7, 1 }
 0x1f4   : > { %v4883_v44 = vsel %vm3605_vm7, 4294967295, %v4882_v44  ;;  %vm3614_vm3 = vmand %vm4885_vm15, %vm4884_vm13  ;;  %vm4899_vm13 = vcmp.le.s32.totalorder %v3429_v40, 1  ;;  %v4907_v40 = vld [vmem:[#allocation34_spill] sm:$0xff] }
 0x1f5   : > { %v4887_v39 = vsel %vm3614_vm3, 4294967295, %v4886_v39  ;;  %vm3629_vm12 = vmand %vm3451_vm6, %vm4890_vm9  ;;  %vm4895_vm3 = vcmp.le.s32.totalorder %v2991_v57, 1  ;;  %vm4896_vm6 = vcmp.eq.s32.totalorder %v3087_v35, %v4875_v36  ;;  %v4900_v57 = vld [vmem:[#allocation32_spill] sm:$0xff]  ;;  %v1025_v36 = vsub.s32 0, %v3583_v47 }
 0x1f6   : > { %vm3636_vm15 = vmand %vm3437_vm11, %vm1355_vm8  ;;  %v3662_v26 = vadd.s32 %v3546_v5, %v4900_v57  ;;  %vm4904_vm11 = vcmp.eq.s32.totalorder %v3087_v35, %v4888_v23  ;;  %v1034_v57 = vsub.s32 0, %v977_v48  ;;  %v1705_v23 = vsel %vm3492_vm0, %v3404_v42, 0.0  ;;  %v5018_v42 = vld [vmem:[#allocation27_spill] sm:$0xff] }
 0x1f7   : > { %vm3648_vm9 = vmand %vm4896_vm6, %vm4895_vm3  ;;  %vm4903_vm6 = vcmp.le.s32.totalorder %v2997_v58, 1  ;;  %v976_v58 = vsub.s32 %v4910_v6, %v2881_v28  ;;  %v1996_v6 = vmin.u32 %v1019_v14, %v972_v1  ;;  %vm4915_vm3 = vnez %v4850_v11  ;;  %v3751_v1 = vpop.permute.xlu0 %1587  ;;  %v4934_v14 = vld [vmem:[#allocation100_spill] sm:$0xff] }
 0x1f8   : > { %vm1386_vm14 = vmand %vm3414_vm10, %vm4899_vm13  ;;  %v4926_v11 = vmov 0  ;;  %vm4928_vm0 = vcmp.le.s32.totalorder %v3001_v32, 1 }
 0x1f9   : > { %vm3674_vm10 = vmand %vm4904_vm11, %vm4903_vm6  ;;  %vm4911_vm6 = vcmp.le.s32.totalorder %v3444_v34, 1  ;;  %vm4914_vm11 = vcmp.le.s32.totalorder %v4851_v56, 1  ;;  %v1563_v56 = vpop.permute.xlu1 %1562  ;;  %v1031_v2 = vsub.s32 0, %v976_v58 }
 0x1fa   : > { %vm3680_vm8 = vmand %vm1386_vm14, %vm1482_vm5  ;;  %v1708_v54 = vsel %vm3575_vm1, %v1563_v56, 0.0  ;;  %vm4952_vm1 = vnez %v4865_v46  ;;  %v4961_v46 = vld [vmem:[#allocation39_spill] sm:$0xff] }
 0x1fb   : > { %vm3696_vm5 = vmand %vm3466_vm4, %vm4911_vm6  ;;  %v1706_v49 = vsel %vm3680_vm8, %v1553_v13, 0.0  ;;  %vm4918_vm6 = vcmp.ge.s32.totalorder %v1451_v21, 1  ;;  %vm4924_vm4 = vcmp.le.s32.totalorder %v2995_v15, 1  ;;  %vm4929_vm8 = vcmp.eq.s32.totalorder %v3087_v35, %v4907_v40  ;;  %v4933_v21 = vld [vmem:[#allocation58_spill] sm:$0xff]  ;;  %v3836_v34 = vpop.permute.xlu0 %1597 }
 0x1fc   : > { %vm3707_vm7 = vmand %vm4915_vm3, %vm4914_vm11  ;;  %v1738_v43 = vadd.f32 %v1706_v49, %v1705_v23  ;;  %vm4921_vm3 = vcmp.le.s32.totalorder %v4860_v25, 1  ;;  %v4932_v25 = vld [vmem:[#allocation45_spill] sm:$0xff]  ;;  %v979_v37 = vsub.s32 %v4933_v21, %v2881_v28  ;;  %v3776_v40 = vmin.u32 %v1034_v57, %v977_v48 }
 0x1fd   : > { %vm3716_vm13 = vmand %vm3636_vm15, %vm4918_vm6  ;;  %vm4925_vm15 = vcmp.eq.s32.totalorder %v3087_v35, %v4902_v55  ;;  %v3756_v32 = vadd.s32 %v3641_v9, %v4932_v25  ;;  %v3774_v55 = vmin.u32 %v1025_v36, %v3583_v47  ;;  %v978_v47 = vsub.s32 %v4945_v52, %v2881_v28  ;;  %v4950_v48 = vld [vmem:[#allocation21_spill] sm:$0xff]  ;;  %v1573_v23 = vpop.permute.xlu1 %1572 }
 0x1fe   : > { %vm3726_vm11 = vmand %vm3592_vm2, %vm4921_vm3  ;;  %v1707_v15 = vsel %vm3716_vm13, %v3475_v29, 0.0  ;;  %vm4935_vm13 = vcmp.ge.s32.totalorder %v3571_v27, 1  ;;  %vm4939_vm2 = vnez %v4887_v39  ;;  %v4940_v27 = vmov 0  ;;  %v4974_v25 = vld [vmem:[#allocation37_spill] sm:$0xff] }
 0x1ff   : > { %v4923_v63 = vsel %vm3726_vm11, 4294967295, %v4922_v63  ;;  %vm3735_vm6 = vmand %vm4925_vm15, %vm4924_vm4  ;;  %v1739_v13 = vadd.f32 %v1738_v43, %v1707_v15  ;;  %vm4944_vm4 = vnez %v4856_v51  ;;  %vm4946_vm15 = vcmp.le.s32.totalorder %v3163_v38, 1  ;;  %v4955_v38 = vld [vmem:[#allocation109_spill] sm:$0xff]  ;;  %v4965_v15 = vld [vmem:[#allocation107_spill] sm:$0xff] }
 0x200   : > { %v4927_v11 = vsel %vm3735_vm6, 4294967295, %v4926_v11  ;;  %vm3744_vm14 = vmand %vm4929_vm8, %vm4928_vm0  ;;  %vm4938_vm8 = vcmp.le.s32.totalorder %v3184_v30, 1  ;;  %vm4947_vm11 = vnez %v4869_v3  ;;  %v1456_v39 = vadd.s32 %v1996_v6, %v4955_v38  ;;  %v4956_v3 = vld [vmem:[#allocation60_spill] sm:$0xff]  ;;  %v5000_v38 = vld [vmem:[#allocation35_spill] sm:$0xff] }
 0x201   : > { %vm3767_vm3 = vmand %vm3696_vm5, %vm4935_vm13  ;;  %vm4943_vm13 = vcmp.le.s32.totalorder %v3544_v33, 1  ;;  %v1740_v33 = vadd.f32 %v1739_v13, %v1708_v54  ;;  %v981_v36 = vsub.s32 %v4956_v3, %v2881_v28  ;;  %v1040_v43 = vsub.s32 0, %v979_v37  ;;  %v4979_v54 = vld [vmem:[#allocation61_spill] sm:$0xff] }
 0x202   : > { %vm3783_vm5 = vmand %vm4939_vm2, %vm4938_vm8  ;;  %vm4951_vm8 = vcmp.le.s32.totalorder %v3502_v19, 1  ;;  %v4959_v19 = vmov 0  ;;  %v1709_v57 = vsel %vm3767_vm3, %v3567_v41, 0.0  ;;  %vm4962_vm2 = vcmp.ge.s32.totalorder %v1454_v59, 1 }
 0x203   : > { %v4941_v27 = vsel %vm3783_vm5, 4294967295, %v4940_v27  ;;  %vm1390_vm0 = vmand %vm4944_vm4, %vm4943_vm13  ;;  %v4968_v41 = vmov 0  ;;  %vm4971_vm3 = vnez %v4883_v44  ;;  %v1741_v56 = vadd.f32 %v1740_v33, %v1709_v57  ;;  %v4977_v44 = vld [vmem:[#allocation112_spill] sm:$0xff]  ;;  %v3931_v33 = vpop.permute.xlu0 %1607 }
 0x204   : > { %vm3799_vm6 = vmand %vm4947_vm11, %vm4946_vm15  ;;  %vm4957_vm11 = vcmp.le.s32.totalorder %v2999_v18, 1  ;;  %vm4958_vm15 = vcmp.eq.s32.totalorder %v3087_v35, %v4934_v14  ;;  %v3872_v21 = vadd.s32 %v3776_v40, %v4977_v44  ;;  %v4978_v14 = vld [vmem:[#allocation33_spill] sm:$0xff]  ;;  %v1037_v29 = vsub.s32 0, %v978_v47 }
 0x205   : > { %vm3808_vm5 = vmand %vm4952_vm1, %vm4951_vm8  ;;  %vm4966_vm1 = vcmp.le.s32.totalorder %v3009_v22, 1  ;;  %vm4967_vm8 = vcmp.eq.s32.totalorder %v3087_v35, %v4942_v0  ;;  %v3859_v22 = vmin.u32 %v1031_v2, %v976_v58  ;;  %v1458_v58 = vadd.s32 %v3774_v55, %v4978_v14  ;;  %v4983_v2 = vld [vmem:[#allocation38_spill] sm:$0xff]  ;;  %v5031_v14 = vld [vmem:[#allocation49_spill] sm:$0xff] }
 0x206   : > { %vm3821_vm13 = vmand %vm4958_vm15, %vm4957_vm11  ;;  %vm1360_vm11 = vcmp.le.s32.totalorder %v1996_v6, 1  ;;  %v980_v13 = vsub.s32 %v4979_v54, %v2881_v28  ;;  %vm4988_vm15 = vcmp.ge.s32.totalorder %v3623_v45, 1  ;;  %v1046_v52 = vsub.s32 0, %v981_v36 }
 0x207   : > { %v4960_v19 = vsel %vm3821_vm13, 4294967295, %v4959_v19  ;;  %vm3832_vm4 = vmand %vm1390_vm0, %vm4962_vm2  ;;  %vm4970_vm0 = vcmp.le.s32.totalorder %v3546_v5, 1  ;;  %v2002_v49 = vmin.u32 %v1037_v29, %v978_v47  ;;  %v5016_v59 = vmov 0  ;;  %v4015_v44 = vpop.permute.xlu0 %1617 }
 0x208   : > { %vm3845_vm13 = vmand %vm4967_vm8, %vm4966_vm1  ;;  %v1710_v6 = vsel %vm3832_vm4, %v1573_v23, 0.0  ;;  %vm4980_vm4 = vcmp.le.s32.totalorder %v3187_v17, 1  ;;  %vm4985_vm8 = vcmp.eq.s32.totalorder %v3087_v35, %v4961_v46  ;;  %v5012_v23 = vld [vmem:[#allocation110_spill] sm:$0xff]  ;;  %v1043_v18 = vsub.s32 0, %v980_v13 }
 0x209   : > { %v4969_v41 = vsel %vm3845_vm13, 4294967295, %v4968_v41  ;;  %vm3853_vm2 = vmand %vm4971_vm3, %vm4970_vm0  ;;  %vm4984_vm3 = vcmp.le.s32.totalorder %v3027_v53, 1  ;;  %v1742_v7 = vadd.f32 %v1741_v56, %v1710_v6  ;;  %v3989_v56 = vmin.u32 %v1046_v52, %v981_v36  ;;  %v5042_v52 = vld [vmem:[#allocation92_spill] sm:$0xff]  ;;  %v5094_v53 = vld [vmem:[#allocation86_spill] sm:$0xff] }
 0x20a   : > { %vm3866_vm13 = vmand %vm3629_vm12, %vm1360_vm11  ;;  %vm4991_vm11 = vcmp.le.s32.totalorder %v3189_v24, 1  ;;  %v1583_v24 = vpop.permute.xlu1 %1582  ;;  %v5026_v5 = vmov 0  ;;  %v5085_v0 = vmov 0  ;;  %v5092_v45 = vmov 0 }
 0x20b   : > { %vm3882_vm0 = vmand %vm3648_vm9, %vm4980_vm4  ;;  %vm1488_vm4 = vcmp.ge.s32.totalorder %v1456_v39, 1  ;;  %v5001_v39 = vld [vmem:[#allocation111_spill] sm:$0xff]  ;;  %v5144_v30 = vmov 0 }
 0x20c   : > { %vm3893_vm1 = vmand %vm4985_vm8, %vm4984_vm3  ;;  %vm4994_vm8 = vcmp.le.s32.totalorder %v3005_v31, 1  ;;  %vm4995_vm3 = vcmp.eq.s32.totalorder %v3087_v35, %v4965_v15  ;;  %v3935_v31 = vmin.u32 %v1040_v43, %v979_v37  ;;  %v5007_v37 = vmov 0  ;;  %v5013_v43 = vld [vmem:[#allocation63_spill] sm:$0xff] }
 0x20d   : > { %vm3901_vm9 = vmand %vm3808_vm5, %vm4988_vm15  ;;  %vm5006_vm15 = vcmp.le.s32.totalorder %v3199_v8, 1  ;;  %v1460_v8 = vadd.s32 %v3859_v22, %v5012_v23  ;;  %v982_v15 = vsub.s32 %v5013_v43, %v2881_v28  ;;  %v5072_v23 = vld [vmem:[#allocation117_spill] sm:$0xff] }
 0x20e   : > { %vm3909_vm12 = vmand %vm3674_vm10, %vm4991_vm11  ;;  %v1711_v51 = vsel %vm3901_vm9, %v3658_v12, 0.0  ;;  %vm1362_vm11 = vcmp.le.s32.totalorder %v3774_v55, 1  ;;  %v5005_v55 = vld [vmem:[#allocation77_spill] sm:$0xff]  ;;  %v1593_v36 = vpop.permute.xlu1 %1592 }
 0x20f   : > { %vm3918_vm5 = vmand %vm4995_vm3, %vm4994_vm8  ;;  %vm5002_vm3 = vcmp.ge.s32.totalorder %v3662_v26, 1  ;;  %v1743_v46 = vadd.f32 %v1742_v7, %v1711_v51  ;;  %v5009_v26 = vld [vmem:[#allocation48_spill] sm:$0xff]  ;;  %v5059_v12 = vld [vmem:[#allocation113_spill] sm:$0xff] }
 0x210   : > { %vm3927_vm10 = vmand %vm3866_vm13, %vm1488_vm4  ;;  %v5041_v7 = vld [vmem:[#allocation116_spill] sm:$0xff] }
 0x211   : > { %vm3944_vm13 = vmand %vm3853_vm2, %vm5002_vm3  ;;  %v1712_v3 = vsel %vm3927_vm10, %v1583_v24, 0.0  ;;  %vm1490_vm10 = vcmp.ge.s32.totalorder %v1458_v58, 1  ;;  %vm5020_vm3 = vnez %v4923_v63  ;;  %v1049_v24 = vsub.s32 0, %v982_v15 }
 0x212   : > { %vm3955_vm8 = vmand %vm3744_vm14, %vm5006_vm15  ;;  %vm5014_vm14 = vcmp.le.s32.totalorder %v3193_v50, 1  ;;  %vm5015_vm15 = vnez %v4927_v11  ;;  %v1744_v6 = vadd.f32 %v1743_v46, %v1712_v3  ;;  %v5023_v50 = vld [vmem:[#allocation62_spill] sm:$0xff]  ;;  %v1713_v63 = vsel %vm3944_vm13, %v3751_v1, 0.0 }
 0x213   : > { %v5008_v37 = vsel %vm3955_vm8, 4294967295, %v5007_v37  ;;  %vm3964_vm9 = vmand %vm3707_vm7, %vm1362_vm11  ;;  %vm5019_vm11 = vcmp.le.s32.totalorder %v3641_v9, 1  ;;  %v983_v11 = vsub.s32 %v5023_v50, %v2881_v28  ;;  %v5028_v9 = vld [vmem:[#allocation95_spill] sm:$0xff]  ;;  %v5034_v1 = vmov 0 }
 0x214   : > { %vm3976_vm4 = vmand %vm5015_vm15, %vm5014_vm14  ;;  %vm5024_vm14 = vcmp.le.s32.totalorder %v4950_v48, 1  ;;  %vm5025_vm15 = vcmp.eq.s32.totalorder %v3087_v35, %v5000_v38  ;;  %vm5036_vm13 = vcmp.le.s32.totalorder %v3776_v40, 1  ;;  %v1745_v54 = vadd.f32 %v1744_v6, %v1713_v63  ;;  %v5043_v40 = vld [vmem:[#allocation114_spill] sm:$0xff]  ;;  %v5050_v38 = vld [vmem:[#allocation121_spill] sm:$0xff] }
 0x215   : > { %v5017_v59 = vsel %vm3976_vm4, 4294967295, %v5016_v59  ;;  %vm3985_vm2 = vmand %vm5020_vm3, %vm5019_vm11  ;;  %vm5033_vm11 = vcmp.eq.s32.totalorder %v3087_v35, %v5009_v26  ;;  %vm5056_vm8 = vcmp.ge.s32.totalorder %v3756_v32, 1  ;;  %v1052_v3 = vsub.s32 0, %v983_v11  ;;  %v5077_v6 = vld [vmem:[#allocation67_spill] sm:$0xff]  ;;  %v5083_v48 = vld [vmem:[#allocation118_spill] sm:$0xff] }
 0x216   : > { %vm3998_vm7 = vmand %vm5025_vm15, %vm5024_vm14  ;;  %vm5032_vm15 = vcmp.le.s32.totalorder %v4805_v61, 1  ;;  %vm1364_vm14 = vcmp.le.s32.totalorder %v3859_v22, 1  ;;  %v5040_v61 = vld [vmem:[#allocation65_spill] sm:$0xff]  ;;  %v2004_v22 = vmin.u32 %v1043_v18, %v980_v13  ;;  %v5055_v13 = vld [vmem:[#allocation96_spill] sm:$0xff]  ;;  %v5063_v26 = vmov 0 }
 0x217   : > { %v5027_v5 = vsel %vm3998_vm7, 4294967295, %v5026_v5  ;;  %vm4011_vm4 = vmand %vm3964_vm9, %vm1490_vm10  ;;  %vm5037_vm9 = vnez %v4941_v27  ;;  %v984_v17 = vsub.s32 %v5040_v61, %v2881_v28  ;;  %v4046_v27 = vadd.s32 %v3935_v31, %v5043_v40  ;;  %v5073_v18 = vld [vmem:[#allocation84_spill] sm:$0xff]  ;;  %v5078_v63 = vld [vmem:[#allocation47_spill] sm:$0xff] }
 0x218   : > { %vm4024_vm3 = vmand %vm5033_vm11, %vm5032_vm15  ;;  %v1714_v29 = vsel %vm4011_vm4, %v1593_v36, 0.0  ;;  %vm5047_vm11 = vnez %v4960_v19  ;;  %vm5051_vm7 = vcmp.le.s32.totalorder %v4845_v20, 1  ;;  %v1462_v20 = vadd.s32 %v2002_v49, %v5059_v12  ;;  %v5082_v36 = vld [vmem:[#allocation20_spill] sm:$0xff] }
 0x219   : > { %v5035_v1 = vsel %vm4024_vm3, 4294967295, %v5034_v1  ;;  %vm4032_vm10 = vmand %vm5037_vm9, %vm5036_vm13  ;;  %vm5046_vm9 = vcmp.le.s32.totalorder %v4974_v25, 1  ;;  %v1746_v25 = vadd.f32 %v1745_v54, %v1714_v29  ;;  %vm5069_vm3 = vcmp.ge.s32.totalorder %v1460_v8, 1 }
 0x21a   : > { %vm4050_vm13 = vmand %vm3799_vm6, %vm1364_vm14  ;;  %vm5052_vm6 = vcmp.eq.s32.totalorder %v3087_v35, %v3402_v4  ;;  %v5060_v4 = vld [vmem:[#allocation64_spill] sm:$0xff]  ;;  %v1055_v47 = vsub.s32 0, %v984_v17  ;;  %v986_v50 = vsub.s32 %v5077_v6, %v2881_v28  ;;  %v2007_v29 = vmin.u32 %v1052_v3, %v983_v11  ;;  %v5106_v3 = vld [vmem:[#allocation50_spill] sm:$0xff] }
 0x21b   : > { %vm4058_vm15 = vmand %vm5047_vm11, %vm5046_vm9  ;;  %v985_v46 = vsub.s32 %v5060_v4, %v2881_v28  ;;  %vm5062_vm9 = vnez %v4969_v41  ;;  %v5099_v40 = vmov 0  ;;  %v5123_v41 = vld [vmem:[#allocation68_spill] sm:$0xff] }
 0x21c   : > { %vm4068_vm14 = vmand %vm5052_vm6, %vm5051_vm7  ;;  %vm5061_vm7 = vcmp.le.s32.totalorder %v4983_v2, 1  ;;  %v1603_v2 = vpop.permute.xlu1 %1602  ;;  %v2008_v19 = vmin.u32 %v1055_v47, %v984_v17  ;;  %v5113_v17 = vmov 0  ;;  %v5134_v47 = vld [vmem:[#allocation26_spill] sm:$0xff]  ;;  %v5137_v6 = vld [vmem:[#allocation40_spill] sm:$0xff] }
 0x21d   : > { %vm4077_vm11 = vmand %vm3985_vm2, %vm5056_vm8  ;;  %vm5065_vm8 = vcmp.le.s32.totalorder %v4807_v60, 1  ;;  %vm5066_vm2 = vcmp.eq.s32.totalorder %v3087_v35, %v5031_v14  ;;  %v4111_v60 = vpop.permute.xlu0 %1627  ;;  %v2006_v14 = vmin.u32 %v1049_v24, %v982_v15  ;;  %v1464_v15 = vadd.s32 %v2004_v22, %v5090_v10  ;;  %v5141_v10 = vld [vmem:[#allocation120_spill] sm:$0xff] }
 0x21e   : > { %vm4088_vm6 = vmand %vm5062_vm9, %vm5061_vm7  ;;  %v1715_v57 = vsel %vm4077_vm11, %v3836_v34, 0.0 }
 0x21f   : > { %v5064_v26 = vsel %vm4088_vm6, 4294967295, %v5063_v26  ;;  %vm4097_vm4 = vmand %vm5066_vm2, %vm5065_vm8  ;;  %vm1218_vm8 = vcmp.eq.s32.totalorder %v3087_v35, %v5072_v23  ;;  %vm5074_vm6 = vcmp.ge.s32.totalorder %v3872_v21, 1  ;;  %v1747_v43 = vadd.f32 %v1746_v25, %v1715_v57  ;;  %v5105_v25 = vld [vmem:[#allocation66_spill] sm:$0xff] }
 0x220   : > { %vm4107_vm7 = vmand %vm4050_vm13, %vm5069_vm3  ;;  %vm1366_vm3 = vcmp.le.s32.totalorder %v2002_v49, 1  ;;  %vm5079_vm2 = vcmp.le.s32.totalorder %v5001_v39, 1  ;;  %v1465_v49 = vadd.s32 %v3989_v56, %v5083_v48  ;;  %v1613_v54 = vpop.permute.xlu1 %1612  ;;  %v987_v12 = vsub.s32 %v5105_v25, %v2881_v28  ;;  %v5158_v21 = vld [vmem:[#allocation122_spill] sm:$0xff] }
 0x221   : > { %vm4121_vm11 = vmand %vm4032_vm10, %vm5074_vm6  ;;  %v1716_v8 = vsel %vm4107_vm7, %v1603_v2, 0.0  ;;  %vm5084_vm7 = vcmp.le.s32.totalorder %v5005_v55, 1  ;;  %vm1494_vm10 = vcmp.ge.s32.totalorder %v1462_v20, 1  ;;  %v1058_v55 = vsub.s32 0, %v985_v46  ;;  %v4179_v61 = vpop.permute.xlu0 %1637 }
 0x222   : > { %vm4134_vm9 = vmand %vm3893_vm1, %vm5079_vm2  ;;  %vm5087_vm1 = vcmp.le.s32.totalorder %v3935_v31, 1  ;;  %v1748_v58 = vadd.f32 %v1747_v43, %v1716_v8  ;;  %v1717_v31 = vsel %vm4121_vm11, %v3931_v33, 0.0  ;;  %vm5101_vm11 = vcmp.le.s32.totalorder %v3989_v56, 1  ;;  %v5110_v56 = vld [vmem:[#allocation69_spill] sm:$0xff] }
 0x223   : > { %vm1398_vm6 = vmand %vm3882_vm0, %vm1366_vm3  ;;  %vm5091_vm0 = vcmp.le.s32.totalorder %v5018_v42, 1  ;;  %v1061_v20 = vsub.s32 0, %v986_v50  ;;  %v988_v4 = vsub.s32 %v5110_v56, %v2881_v28  ;;  %v2009_v2 = vmin.u32 %v1058_v55, %v985_v46  ;;  %v5184_v8 = vld [vmem:[#allocation101_spill] sm:$0xff] }
 0x224   : > { %vm4148_vm13 = vmand %vm3918_vm5, %vm5084_vm7  ;;  %vm5097_vm7 = vcmp.le.s32.totalorder %v5028_v9, 1  ;;  %v1749_v24 = vadd.f32 %v1748_v58, %v1717_v31  ;;  %v989_v23 = vsub.s32 %v5123_v41, %v2881_v28 }
 0x225   : > { %v5086_v0 = vsel %vm4148_vm13, 4294967295, %v5085_v0  ;;  %vm4156_vm2 = vmand %vm3909_vm12, %vm5087_vm1  ;;  %vm1368_vm12 = vcmp.le.s32.totalorder %v2004_v22, 1  ;;  %v5122_v22 = vld [vmem:[#allocation119_spill] sm:$0xff]  ;;  %v4267_v43 = vpop.permute.xlu0 %1647  ;;  %v2010_v39 = vmin.u32 %v1061_v20, %v986_v50  ;;  %v1067_v55 = vsub.s32 0, %v988_v4 }
 0x226   : > { %vm4166_vm5 = vmand %vm1218_vm8, %vm5091_vm0  ;;  %vm5098_vm8 = vcmp.eq.s32.totalorder %v3087_v35, %v5082_v36  ;;  %vm5107_vm0 = vnez %v5017_v59  ;;  %v1466_v57 = vadd.s32 %v2006_v14, %v5122_v22  ;;  %v1070_v50 = vsub.s32 0, %v989_v23 }
 0x227   : > { %v5093_v45 = vsel %vm4166_vm5, 4294967295, %v5092_v45  ;;  %vm4175_vm3 = vmand %vm1398_vm6, %vm1494_vm10  ;;  %vm5102_vm10 = vnez %v5008_v37  ;;  %vm5116_vm5 = vcmp.eq.s32.totalorder %v3087_v35, %v5094_v53  ;;  %v5142_v53 = vld [vmem:[#allocation72_spill] sm:$0xff]  ;;  %v1470_v37 = vadd.s32 %v2010_v39, %v5158_v21 }
 0x228   : > { %vm4186_vm1 = vmand %vm5098_vm8, %vm5097_vm7  ;;  %v1718_v51 = vsel %vm4175_vm3, %v1613_v54, 0.0  ;;  %vm1495_vm8 = vcmp.ge.s32.totalorder %v4046_v27, 1  ;;  %vm5111_vm3 = vcmp.le.s32.totalorder %v5041_v7, 1  ;;  %vm5115_vm7 = vcmp.le.s32.totalorder %v5042_v52, 1  ;;  %v5119_v27 = vld [vmem:[#allocation97_spill] sm:$0xff] }
 0x229   : > { %v5100_v40 = vsel %vm4186_vm1, 4294967295, %v5099_v40  ;;  %vm4196_vm6 = vmand %vm5102_vm10, %vm5101_vm11  ;;  %vm5112_vm10 = vnez %v5027_v5  ;;  %v1750_v5 = vadd.f32 %v1749_v24, %v1718_v51  ;;  %v5154_v24 = vld [vmem:[#allocation70_spill] sm:$0xff]  ;;  %v2012_v56 = vmin.u32 %v1067_v55, %v988_v4 }
 0x22a   : > { %vm4208_vm11 = vmand %vm5107_vm0, %vm1368_vm12  ;;  %v991_v25 = vsub.s32 %v5154_v24, %v2881_v28  ;;  %v1443_v11 = vadd.s32 %v5119_v27, %v5028_v9  ;;  %v1444_v21 = vadd.s32 %v5134_v47, %v5042_v52 }
 0x22b   : > { %vm4218_vm1 = vmand %vm5112_vm10, %vm5111_vm3  ;;  %vm1496_vm3 = vcmp.ge.s32.totalorder %v1464_v15, 1  ;;  %v1468_v15 = vadd.s32 %v2008_v19, %v5141_v10 }
 0x22c   : > { %v5114_v17 = vsel %vm4218_vm1, 4294967295, %v5113_v17  ;;  %vm4227_vm12 = vmand %vm5116_vm5, %vm5115_vm7  ;;  %vm5124_vm5 = vcmp.le.s32.totalorder %v5050_v38, 1  ;;  %vm5125_vm7 = vnez %v5035_v1  ;;  %vm1497_vm1 = vcmp.ge.s32.totalorder %v1465_v49, 1  ;;  %v1623_v38 = vpop.permute.xlu1 %1622 }
 0x22d   : > { %vm4234_vm13 = vmand %vm4156_vm2, %vm1495_vm8  ;;  %vm5128_vm2 = vcmp.le.s32.totalorder %v5055_v13, 1  ;;  %vm5129_vm8 = vcmp.eq.s32.totalorder %v3087_v35, %v3565_v16  ;;  %v1064_v49 = vsub.s32 0, %v987_v12  ;;  %v1076_v16 = vsub.s32 0, %v991_v25 }
 0x22e   : > { %vm4245_vm10 = vmand %vm5125_vm7, %vm5124_vm5  ;;  %v1719_v46 = vsel %vm4234_vm13, %v4015_v44, 0.0  ;;  %v1467_v44 = vadd.s32 %v2007_v29, %v5137_v6  ;;  %vm1370_vm13 = vcmp.le.s32.totalorder %v2006_v14, 1  ;;  %v990_v14 = vsub.s32 %v5142_v53, %v2881_v28 }
 0x22f   : > { %vm4254_vm0 = vmand %vm5129_vm8, %vm5128_vm2  ;;  %v1751_v48 = vadd.f32 %v1750_v5, %v1719_v46  ;;  %vm5143_vm8 = vcmp.le.s32.totalorder %v5078_v63, 1  ;;  %v5149_v63 = vld [vmem:[#allocation46_spill] sm:$0xff]  ;;  %v2011_v51 = vmin.u32 %v1064_v49, %v987_v12  ;;  %v2013_v12 = vmin.u32 %v1070_v50, %v989_v23 }
 0x230   : > { %vm4263_vm5 = vmand %vm4208_vm11, %vm1496_vm3  ;;  %vm5138_vm11 = vcmp.le.s32.totalorder %v5073_v18, 1  ;;  %v1469_v32 = vadd.s32 %v2009_v2, %v5149_v63  ;;  %v1633_v31 = vpop.permute.xlu1 %1632  ;;  %v1073_v7 = vsub.s32 0, %v990_v14  ;;  %v5159_v5 = vld [vmem:[#allocation74_spill] sm:$0xff]  ;;  %vm5166_vm7 = vnez %v5100_v40 }
 0x231   : > { %vm4272_vm2 = vmand %vm4196_vm6, %vm1497_vm1  ;;  %v1720_v36 = vsel %vm4263_vm5, %v1623_v38, 0.0  ;;  %vm1371_vm1 = vcmp.le.s32.totalorder %v2007_v29, 1  ;;  %v992_v22 = vsub.s32 %v5159_v5, %v2881_v28  ;;  %v5171_v38 = vld [vmem:[#allocation23_spill] sm:$0xff]  ;;  %v1442_v63 = vadd.s32 %v5106_v3, %v5018_v42 }
 0x232   : > { %vm4283_vm3 = vmand %vm4068_vm14, %vm5138_vm11  ;;  %vm5146_vm14 = vnez %v5064_v26  ;;  %v1752_v62 = vadd.f32 %v1751_v48, %v1720_v36  ;;  %v1721_v29 = vsel %vm4272_vm2, %v4111_v60, 0.0  ;;  %v4314_v26 = vpop.permute.xlu0 %1657  ;;  %vm1372_vm2 = vcmp.le.s32.totalorder %v2008_v19, 1  ;;  %v5190_v42 = vld [vmem:[#allocation75_spill] sm:$0xff] }
 0x233   : > { %vm1402_vm6 = vmand %vm4058_vm15, %vm1370_vm13  ;;  %vm1498_vm15 = vcmp.ge.s32.totalorder %v1466_v57, 1  ;;  %vm1373_vm13 = vcmp.le.s32.totalorder %v2009_v2, 1  ;;  %v5164_v57 = vld [vmem:[#allocation73_spill] sm:$0xff]  ;;  %v2014_v48 = vmin.u32 %v1073_v7, %v990_v14  ;;  %v1079_v49 = vsub.s32 0, %v992_v22 }
 0x234   : > { %vm4296_vm5 = vmand %vm4097_vm4, %vm5143_vm8  ;;  %v1753_v33 = vadd.f32 %v1752_v62, %v1721_v29  ;;  %v993_v4 = vsub.s32 %v5164_v57, %v2881_v28  ;;  %v1643_v41 = vpop.permute.xlu1 %1642  ;;  %v1473_v14 = vadd.s32 %v2013_v12, %v5184_v8  ;;  %v2015_v54 = vmin.u32 %v1076_v16, %v991_v25  ;;  %v5197_v16 = vld [vmem:[#allocation76_spill] sm:$0xff]  ;;  %v5200_v8 = vld [vmem:[#allocation81_spill] sm:$0xff] }
 0x235   : > { %v5145_v30 = vsel %vm4296_vm5, 4294967295, %v5144_v30  ;;  %vm4302_vm11 = vmand %vm5146_vm14, %vm1371_vm1  ;;  %vm1499_vm1 = vcmp.ge.s32.totalorder %v1467_v44, 1  ;;  %v5177_v44 = vld [vmem:[#allocation41_spill] sm:$0xff]  ;;  %v2016_v58 = vmin.u32 %v1079_v49, %v992_v22  ;;  %v5199_v49 = vld [vmem:[#allocation82_spill] sm:$0xff] }
 0x236   : > { %vm4310_vm4 = vmand %vm1402_vm6, %vm1498_vm15  ;;  %vm5155_vm6 = vnez %v5086_v0  ;;  %vm1500_vm15 = vcmp.ge.s32.totalorder %v1468_v15, 1  ;;  %v4362_v23 = vpop.permute.xlu0 %1667  ;;  %v1471_v36 = vadd.s32 %v2011_v51, %v5177_v44  ;;  %v5183_v15 = vld [vmem:[#allocation42_spill] sm:$0xff] }
 0x237   : > { %vm4318_vm8 = vmand %vm4134_vm9, %vm1373_vm13  ;;  %v1722_v60 = vsel %vm4310_vm4, %v1633_v31, 0.0  ;;  %vm5160_vm9 = vcmp.le.s32.totalorder %v5106_v3, 1  ;;  %vm5161_vm13 = vnez %v5093_v45  ;;  %v1472_v55 = vadd.s32 %v2012_v56, %v5183_v15 }
 0x238   : > { %vm4328_vm14 = vmand %vm5155_vm6, %vm1372_vm2  ;;  %v1754_v0 = vadd.f32 %v1753_v33, %v1722_v60  ;;  %vm5165_vm6 = vcmp.le.s32.totalorder %v5119_v27, 1  ;;  %v1653_v18 = vpop.permute.xlu1 %1652  ;;  %v1474_v33 = vadd.s32 %v2014_v48, %v1442_v63  ;;  %v995_v3 = vsub.s32 %v5190_v42, %v2881_v28 }
 0x239   : > { %vm4339_vm4 = vmand %vm5161_vm13, %vm5160_vm9  ;;  %vm1501_vm9 = vcmp.ge.s32.totalorder %v1469_v32, 1  ;;  %vm1374_vm13 = vcmp.le.s32.totalorder %v2010_v39, 1  ;;  %v5187_v32 = vld [vmem:[#allocation71_spill] sm:$0xff]  ;;  %v1475_v28 = vadd.s32 %v2015_v54, %v1443_v11  ;;  %v1476_v52 = vadd.s32 %v2016_v58, %v1444_v21 }
 0x23a   : > { %vm1531_vm2 = vmand %vm4302_vm11, %vm1499_vm1  ;;  %vm1317_vm1 = vcmp.le.s32.totalorder %v5171_v38, 1  ;;  %v1678_v62 = vpop.permute.xlu0 %1677 }
 0x23b   : > { %vm4351_vm5 = vmand %vm5166_vm7, %vm5165_vm6  ;;  %v1723_v45 = vsel %vm1531_vm2, %v4179_v61, 0.0  ;;  %vm1375_vm2 = vcmp.le.s32.totalorder %v2011_v51, 1 }
 0x23c   : > { %vm4358_vm11 = vmand %vm4328_vm14, %vm1500_vm15  ;;  %v1755_v1 = vadd.f32 %v1754_v0, %v1723_v45  ;;  %vm5174_vm14 = vcmp.le.s32.totalorder %v5134_v47, 1  ;;  %v1663_v25 = vpop.permute.xlu1 %1662  ;;  %v1088_v47 = vsub.s32 0, %v995_v3 }
 0x23d   : > { %vm4367_vm7 = vmand %vm4318_vm8, %vm1501_vm9  ;;  %v1724_v61 = vsel %vm4358_vm11, %v1643_v41, 0.0  ;;  %vm5178_vm8 = vnez %v5114_v17  ;;  %vm1502_vm9 = vcmp.ge.s32.totalorder %v1470_v37, 1  ;;  %v1082_v17 = vsub.s32 0, %v993_v4 }
 0x23e   : > { %vm4377_vm15 = vmand %vm4227_vm12, %vm5174_vm14  ;;  %v1756_v10 = vadd.f32 %v1755_v1, %v1724_v61  ;;  %v1725_v53 = vsel %vm4367_vm7, %v4267_v43, 0.0  ;;  %v5188_v43 = vld [vmem:[#allocation44_spill] sm:$0xff]  ;;  %vm1503_vm7 = vcmp.ge.s32.totalorder %v1471_v36, 1  ;;  %vm5189_vm14 = vnez %v5145_v30  ;;  %v1683_v20 = vpop.permute.xlu0 %1682  ;;  %v5196_v61 = vld [vmem:[#allocation78_spill] sm:$0xff] }
 0x23f   : > { %vm1406_vm6 = vmand %vm5178_vm8, %vm1374_vm13  ;;  %vm1377_vm13 = vcmp.le.s32.totalorder %v2013_v12, 1  ;;  %v767_v31 = vsub.s32 %v5188_v43, %v5187_v32  ;;  %vm1504_vm8 = vcmp.ge.s32.totalorder %v1472_v55, 1  ;;  %v2017_v51 = vmin.u32 %v1082_v17, %v993_v4  ;;  %v5198_v36 = vld [vmem:[#allocation80_spill] sm:$0xff] }
 0x240   : > { %vm4386_vm11 = vmand %vm4254_vm0, %vm1317_vm1  ;;  %v1757_v29 = vadd.f32 %v1756_v10, %v1725_v53  ;;  %vm1376_vm1 = vcmp.le.s32.totalorder %v2012_v56, 1  ;;  %v5193_v56 = vld [vmem:[#allocation25_spill] sm:$0xff]  ;;  %v1673_v0 = vpop.permute.xlu1 %1672  ;;  %v2019_v46 = vmin.u32 %v1088_v47, %v995_v3 }
 0x241   : > { %vm4392_vm12 = vmand %vm4245_vm10, %vm1375_vm2  ;;  %v860_v37 = vsub.s32 0, %v767_v31  ;;  %v632_v7 = vsub.s32 0, %v5193_v56 }
 0x242   : > { %vm1534_vm0 = vmand %vm1406_vm6, %vm1502_vm9  ;;  %vm1505_vm6 = vcmp.ge.s32.totalorder %v1473_v14, 1  ;;  %v1688_v45 = vpop.permute.xlu0 %1687  ;;  %v5201_v14 = vld [vmem:[#allocation79_spill] sm:$0xff] }
 0x243   : > { %vm4403_vm10 = vmand %vm4283_vm3, %vm1377_vm13  ;;  %v1726_v50 = vsel %vm1534_vm0, %v1653_v18, 0.0  ;;  %vm1379_vm0 = vcmp.le.s32.totalorder %v2015_v54, 1  ;;  %v1987_v4 = vmin.u32 %v860_v37, %v767_v31  ;;  %v1955_v41 = vmin.u32 %v632_v7, %v5193_v56  ;;  %v5202_v18 = vld [vmem:[#allocation83_spill] sm:$0xff] }
 0x244   : > { %vm1408_vm3 = vmand %vm5189_vm14, %vm1376_vm1  ;;  %v1758_v60 = vadd.f32 %v1757_v29, %v1726_v50 }
 0x245   : > { %vm1535_vm2 = vmand %vm4392_vm12, %vm1503_vm7  ;;  %vm1378_vm12 = vcmp.le.s32.totalorder %v2014_v48, 1  ;;  %vm1506_vm7 = vcmp.ge.s32.totalorder %v1474_v33, 1  ;;  %v1447_v6 = vadd.s32 %v1987_v4, %v1955_v41 }
 0x246   : > { %v1727_v24 = vsel %vm1535_vm2, %v4314_v26, 0.0  ;;  %vm1536_vm9 = vmand %vm1408_vm3, %vm1504_vm8  ;;  %v1445_v26 = vadd.s32 %v5171_v38, %v5055_v13  ;;  %vm1507_vm2 = vcmp.ge.s32.totalorder %v1475_v28, 1  ;;  %v1186_v38 = vpop.permute.xlu1 %1185  ;;  %v1693_v15 = vpop.permute.xlu0 %1692 }
 0x247   : > { %vm4422_vm13 = vmand %vm4403_vm10, %vm1505_vm6  ;;  %v1728_v27 = vsel %vm1536_vm9, %v1663_v25, 0.0  ;;  %v1759_v30 = vadd.f32 %v1758_v60, %v1727_v24  ;;  %vm1508_vm9 = vcmp.ge.s32.totalorder %v1476_v52, 1  ;;  %v1479_v59 = vadd.s32 %v2019_v46, %v1447_v6  ;;  %v1737_v60 = vld [vmem:[#allocation2] sm:$0x1] }
 0x248   : > { %vm1410_vm1 = vmand %vm4339_vm4, %vm1378_vm12  ;;  %v1729_v19 = vsel %vm4422_vm13, %v4362_v23, 0.0  ;;  %vm1380_vm4 = vcmp.le.s32.totalorder %v2016_v58, 1  ;;  %v1477_v13 = vadd.s32 %v2017_v51, %v1445_v26 }
 0x249   : > { %vm4435_vm10 = vmand %vm4351_vm5, %vm1379_vm0  ;;  %v1760_v22 = vadd.f32 %v1759_v30, %v1728_v27  ;;  %vm1381_vm5 = vcmp.le.s32.totalorder %v2017_v51, 1  ;;  %vm1222_vm0 = vcmp.eq.s32.totalorder %v3087_v35, %v1186_v38 }
 0x24a   : > { %vm1538_vm14 = vmand %vm1410_vm1, %vm1506_vm7  ;;  %vm1254_vm1 = vcmp.le.s32.totalorder %v5196_v61, 1  ;;  %v1189_v39 = vpop.permute.xlu1 %1188  ;;  %v1703_v50 = vpop.permute.xlu0 %1702 }
 0x24b   : > { %vm1412_vm3 = vmand %vm4377_vm15, %vm1380_vm4  ;;  %v1730_v12 = vsel %vm1538_vm14, %v1673_v0, 0.0  ;;  %v1761_v57 = vadd.f32 %v1760_v22, %v1729_v19  ;;  %vm1509_vm15 = vcmp.ge.s32.totalorder %v1477_v13, 1  ;;  %vm1382_vm4 = vcmp.le.s32.totalorder %v5198_v36, 1 }
 0x24c   : > { %vm1413_vm8 = vmand %vm4386_vm11, %vm1381_vm5 }
 0x24d   : > { %vm1539_vm6 = vmand %vm4435_vm10, %vm1507_vm2  ;;  %v1762_v2 = vadd.f32 %v1761_v57, %v1730_v12  ;;  %vm1318_vm10 = vcmp.le.s32.totalorder %v5197_v16, 1  ;;  %vm1223_vm2 = vcmp.eq.s32.totalorder %v3087_v35, %v1189_v39 }
 0x24e   : > { %v1731_v23 = vsel %vm1539_vm6, %v1678_v62, 0.0  ;;  %vm1540_vm13 = vmand %vm1412_vm3, %vm1508_vm9  ;;  %vm1510_vm3 = vcmp.ge.s32.totalorder %v5199_v49, 1  ;;  %vm1319_vm9 = vcmp.le.s32.totalorder %v1987_v4, 1  ;;  %v1192_v53 = vpop.permute.xlu1 %1191  ;;  %v5203_v62 = vld [vmem:[#allocation85_spill] sm:$0xff] }
 0x24f   : > { %v1763_v40 = vadd.f32 %v1762_v2, %v1731_v23  ;;  %vm1541_vm12 = vmand %vm1413_vm8, %vm1509_vm15  ;;  %v1732_v1 = vsel %vm1540_vm13, %v1683_v20, 0.0  ;;  %vm1255_vm8 = vcmp.le.s32.totalorder %v1955_v41, 1  ;;  %vm1383_vm15 = vcmp.le.s32.totalorder %v2019_v46, 1 }
 0x250   : > { %vm1286_vm11 = vmand %vm1222_vm0, %vm1254_vm1  ;;  %v1733_v48 = vsel %vm1541_vm12, %v1688_v45, 0.0  ;;  %vm1511_vm12 = vcmp.ge.s32.totalorder %v1479_v59, 1  ;;  %vm1224_vm1 = vcmp.eq.s32.totalorder %v3087_v35, %v1192_v53 }
 0x251   : > { %v1764_v44 = vadd.f32 %v1763_v40, %v1732_v1  ;;  %vm1350_vm7 = vmand %vm1286_vm11, %vm1318_vm10  ;;  %vm1256_vm11 = vcmp.le.s32.totalorder %v5200_v8, 1 }
 0x252   : > { %vm1414_vm14 = vmand %vm1350_vm7, %vm1382_vm4  ;;  %vm1320_vm4 = vcmp.le.s32.totalorder %v5201_v14, 1  ;;  %v1698_v34 = vpop.permute.xlu1 %1697 }
 0x253   : > { %v1765_v10 = vadd.f32 %v1764_v44, %v1733_v48  ;;  %vm1542_vm5 = vmand %vm1414_vm14, %vm1510_vm3  ;;  %vm1384_vm3 = vcmp.le.s32.totalorder %v5202_v18, 1 }
 0x254   : > { %v1734_v55 = vsel %vm1542_vm5, %v1693_v15, 0.0  ;;  %vm1287_vm6 = vmand %vm1223_vm2, %vm1255_vm8  ;;  %vm1512_vm5 = vcmp.ge.s32.totalorder %v5203_v62, 1 }
 0x255   : > { %v1766_v17 = vadd.f32 %v1765_v10, %v1734_v55  ;;  %vm1351_vm13 = vmand %vm1287_vm6, %vm1319_vm9 }
 0x256   : > { %vm1415_vm0 = vmand %vm1351_vm13, %vm1383_vm15 }
 0x257   : > { %vm1543_vm10 = vmand %vm1415_vm0, %vm1511_vm12 }
 0x258   : > { %vm1288_vm7 = vmand %vm1224_vm1, %vm1256_vm11  ;;  %v1735_v29 = vsel %vm1543_vm10, %v1698_v34, 0.0 }
 0x259   : > { %vm1352_vm14 = vmand %vm1288_vm7, %vm1320_vm4  ;;  %v1767_v32 = vadd.f32 %v1766_v17, %v1735_v29 }
 0x25a   : > { %vm1416_vm2 = vmand %vm1352_vm14, %vm1384_vm3 }
 0x25b   : > { %vm1544_vm8 = vmand %vm1416_vm2, %vm1512_vm5 }
 0x25c   : > { %v1736_v63 = vsel %vm1544_vm8, %v1703_v50, 0.0 }
 0x25d   : > { %v1768_v43 = vadd.f32 %v1767_v32, %v1736_v63 }
 0x25f   : > { %v1769_v35 = vrot.slane %v1768_v43, 4 }
 0x261   : > { %v1770_v31 = vadd.f32 %v1769_v35, %v1768_v43 }
 0x263   : > { %v1771_v54 = vrot.slane %v1770_v31, 2 }
 0x265   : > { %v1772_v11 = vadd.f32 %v1771_v54, %v1770_v31 }
 0x267   : > { %v1773_v58 = vrot.slane %v1772_v11, 1 }
 0x269   : > { %v1774_v33 = vadd.f32 %v1773_v58, %v1772_v11 }
 0x26b   : > { %v1775_v51 = vadd.f32 %v1774_v33, %v1737_v60 }
 0x26d   : > { %1776 = vst [vmem:[#allocation2] sm:$0x1] %v1775_v51 }
 0x26e PF: > { %p2021_p13 = scmp.ne.s32.totalorder %s2215_s8, 2 }
 0x270   : > { %1780 = sbr.rel (%p2021_p13) target bundleno = 664 (0x298), region = 48 }
 0x275   : > { %v1781_v42 = vld [vmem:[%s2363_s13] sm:$0xf]  ;;  %vm1783_vm6 = vcmask 1043456  }
 0x276   : > { %v1782_v3 = vmul.f32 %v1781_v42, %v1781_v42  ;;  %v1791_v28 = vld [vmem:[#allocation2] sm:$0x1] }
 0x278   : > { %v1784_v24 = vsel %vm1783_vm6, %v1782_v3, 0.0 }
 0x279   : > { %v1785_v25 = vrot.slane %v1784_v24, 4 }
 0x27b   : > { %v1786_v9 = vadd.f32 %v1785_v25, %v1784_v24 }
 0x27d   : > { %v1787_v27 = vrot.slane %v1786_v9, 2 }
 0x27f   : > { %v1788_v30 = vadd.f32 %v1787_v27, %v1786_v9 }
 0x281   : > { %v1789_v20 = vrot.slane %v1788_v30, 1 }
 0x283   : > { %v1790_v21 = vadd.f32 %v1789_v20, %v1788_v30 }
 0x285   : > { %v1792_v37 = vmax.f32 %v1790_v21, 1e-12 }
 0x287   : > { %2111 = vrcp.f32 %v1792_v37 }
 0x294   : > { %v2112_v26 = vpop.eup %2111 }
 0x295   : > { %v1794_v56 = vmul.f32 %v2112_v26, %v1791_v28 }
 0x297   : > { %1795 = vst [vmem:[%s2377_s27] sm:$0x1] %v1794_v56 }
 0x298 PF: > { %s2022_s8 = sshll.u32 %s2219_s9, 4  ;;  %s1809_s24 = sshll.u32 %s2377_s27, 4  ;;  %s1810_s24 = int_to_ptr.vmem [resolvable:$true] %s1809_s24 }
 0x299   : > { %s1807_s13 = scalar_lea.hbm %s4515_s6, %s2022_s8  ;;  %s5204_s23 = sand.u32 1, %s2207_s30  }
 0x29a   : > { %s1797_s15 = scalar_lea.sflag [#allocation7], %s5204_s23  ;;  %s2137_s20 = scalar_lea.vmem %s1810_s24, 16 }
 0x29b   : > { %p2138_p5 = scmp.ne.s32.totalorder %s1810_s24, %s2137_s20  ;;  %p5205_p6 = scmp.ne.s32.totalorder %s4609_s17, 0 }
 0x29c   : > { %s2240_s16 = smov [#allocation6]  }
 0x29d   : > { %p2139_p7 = pnand %p2138_p5, %p5205_p6  ;;  %s2141_s0 = sshll.u32 %s2240_s16, 4  ;;  %s2142_s0 = int_to_ptr.vmem [resolvable:$false] %s2141_s0 }
 0x29e   : > { %s2143_s19 = scalar_lea.vmem %s2142_s0, 32  ;;  %p2144_p9 = scmp.lt.s32.totalorder %s1810_s24, %s2142_s0 }
 0x29f   : > { %p2140_p8 = pneg %p2139_p7  ;;  %p2145_p10 = scmp.lt.s32.totalorder %s2143_s19, %s2137_s20 }
 0x2a1   : > { %p2146_p11 = por %p2145_p10, %p2144_p9 }
 0x2a3   : > { %p2147_p12 = pnand %p2146_p11, %p2140_p8 }
 0x2a5   : > { %2150 = shalt.err (!%p2147_p12)
}
 0x2a6   : > { %s2151_s9 = scalar_lea.hbm %s1807_s13, 16  ;;  %s2155_s26 = scalar_lea.hbm %s4515_s6, 96 }
 0x2a7   : > { %p2152_p0 = scmp.ne.s32.totalorder %s1807_s13, %s2151_s9  ;;  %p2156_p4 = scmp.lt.s32.totalorder %s1807_s13, %s4515_s6 }
 0x2a8   : > { %p2157_p3 = scmp.lt.s32.totalorder %s2155_s26, %s2151_s9 }
 0x2a9   : > { %p2153_p1 = pnand %p2152_p0, %p5205_p6 }
 0x2aa   : > { %p2158_p13 = por %p2157_p3, %p2156_p4 }
 0x2ab   : > { %p2154_p2 = pneg %p2153_p1 }
 0x2ad   : > { %p2159_p5 = pnand %p2158_p13, %p2154_p2 }
 0x2af   : > { %2162 = shalt.err (!%p2159_p5)
}
 0x2b0   : > { %2025 = dma.vmem_to_hbm [thread:$0]  (%p5205_p6), %s1810_s24, 16, %s1807_s13, %s1797_s15  }
 0x2b1 PF: > { %s5206_s2 = sld [smem:[#allocation14_spill]] }
 0x2b2   : > { %s5207_s18 = sld [smem:[#allocation10_spill]] }
 0x2b3   : > { %s5208_s25 = sld [smem:[#allocation17_spill]] }
 0x2b7   : > { %p2031_p7 = scmp.ge.s32.totalorder %s5206_s2, 2 }
 0x2b8   : > { %s1821_s4 = sand.u32 1, %s5207_s18  }
 0x2b9   : > { %p5209_p8 = scmp.ne.s32.totalorder %s5208_s25, 0  ;;  %s1822_s1 = scalar_lea.sflag [#allocation7], %s1821_s4 }
 0x2bb   : > { %p2028_p9 = pnand %p2031_p7, %p5209_p8 }
 0x2bd   : > { %p2029_p10 = pneg %p2028_p9 }
 0x2bf   : > { %2198 = dma.done.wait (%p2029_p10), %s1822_s1, 16  }
 0x2c0   : > { %2200 = vsyncadd (%p2029_p10), %s1822_s1, 4294967280  ;;  %s29_s12 = sadd.s32 1, %s5206_s2   ;;  %s5210_s11 = sld [smem:[#allocation11_spill]] }
 0x2c1   : > { %p26_p11 = scmp.ge.s32.totalorder %s29_s12, 20   ;;  %s5211_s7 = sld [smem:[#allocation18_spill]] }
 0x2c2   : > { %s5212_s8 = sld [smem:[#allocation12_spill]]  ;;  %s5216_s1 = smov %s2207_s30 }
 0x2c3   : > { %s5213_s9 = sld [smem:[#allocation13_spill]] }
 0x2c4   : > { %s5214_s10 = sld [smem:[#allocation15_spill]] }
 0x2c5   : > { %s5215_s17 = sld [smem:[#allocation16_spill]] }
 0x2c6   : > { %s5217_s30 = smov %s5210_s11 }
 0x2c7   :  { %28 = sbr.rel (!%p26_p11) target bundleno = 32 (0x20), region = 92 }
 0x2cb   : > { %s5218_s11 = smov %s5215_s17 }
 0x2cc   :  { %1826 = vsyncpa [#allocation7], 1 }
 0x2cd   :  { %1828 = vsyncpa [#allocation7 + $0x1], 1 }

</bundles_post_ra>
